<compile_context>
chip_gen: v7x
topology: tpu7x:2x2x1
jax: 0.10.0
libtpu: 0.0.40
codegen_flags: <defaults>
</compile_context>

<pallas_src>
import numpy as np
import jax
import jax.numpy as jnp
from jax.experimental import pallas as pl
from jax.experimental.pallas import tpu as pltpu

EPS = 1e-5


def _round_up(n, m):
    return (n + m - 1) // m * m


# --------------------------------------------------------------------------
# Fused kernel: (pool+pad+fc1 folded) -> [bn1 folded] fc2 -> fc3 ->
#               [bn2 folded] fc4 -> fc5 -> fc6 logits
# --------------------------------------------------------------------------
def fused_kernel(x_ref,
                 wh_ref, bh_ref,
                 w2_ref, b2_ref,
                 w3_ref, b3_ref,
                 w4_ref, b4_ref,
                 w5_ref, b5_ref,
                 w6_ref, b6_ref,
                 o_ref):
    bf16 = jnp.bfloat16
    f32 = jnp.float32
    # pool + pad + fc1 (single folded matmul), bias + ReLU on the f32 accumulator
    h = jnp.dot(x_ref[...].astype(bf16), wh_ref[...], preferred_element_type=f32)
    h = jnp.maximum(h + bh_ref[...], 0.0)                       # (bt, 196)
    # fc2 (bn1 affine pre-folded into W2/b2) + ReLU
    h = jnp.dot(h.astype(bf16), w2_ref[...], preferred_element_type=f32)
    h = jnp.maximum(h + b2_ref[...], 0.0)                       # (bt, 400)
    # fc3 + ReLU
    h = jnp.dot(h.astype(bf16), w3_ref[...], preferred_element_type=f32)
    h = jnp.maximum(h + b3_ref[...], 0.0)                       # (bt, 800)
    # fc4 (bn2 affine pre-folded into W4/b4) + ReLU
    h = jnp.dot(h.astype(bf16), w4_ref[...], preferred_element_type=f32)
    h = jnp.maximum(h + b4_ref[...], 0.0)                       # (bt, 200)
    # fc5 + ReLU
    h = jnp.dot(h.astype(bf16), w5_ref[...], preferred_element_type=f32)
    h = jnp.maximum(h + b5_ref[...], 0.0)                       # (bt, 50)
    # fc6 (logits; output lane-padded 10 -> 128, sliced in the wrapper)
    o_ref[...] = jnp.dot(h.astype(bf16), w6_ref[...],
                         preferred_element_type=f32) + b6_ref[...]


# --------------------------------------------------------------------------
# Raw (PyTorch-style) parameters
# --------------------------------------------------------------------------
def init_raw_params(seed=0):
    key = jax.random.PRNGKey(seed)
    p = {}
    dims = [(17, 14), (196, 400), (400, 800), (800, 200), (200, 50), (50, 10)]
    for idx, (fi, fo) in enumerate(dims, start=1):
        key, kw, kb = jax.random.split(key, 3)
        bound = float(1.0 / np.sqrt(fi))
        p[f"w{idx}"] = jax.random.uniform(kw, (fo, fi), jnp.float32, -bound, bound)
        p[f"b{idx}"] = jax.random.uniform(kb, (fo,), jnp.float32, -bound, bound)
    for name, c in [("bn1", 14), ("bn2", 800)]:
        key, k1, k2, k3, k4 = jax.random.split(key, 5)
        p[f"{name}_g"] = jax.random.uniform(k1, (c,), jnp.float32, 0.8, 1.2)
        p[f"{name}_b"] = 0.1 * jax.random.normal(k2, (c,), jnp.float32)
        p[f"{name}_rm"] = 0.1 * jax.random.normal(k3, (c,), jnp.float32)
        p[f"{name}_rv"] = jax.random.uniform(k4, (c,), jnp.float32, 0.5, 1.5)
    return p


# --------------------------------------------------------------------------
# One-time parameter preparation (fold, transpose, bf16-cast; minimal padding)
# --------------------------------------------------------------------------
def prepare_params(raw):
    # AvgPool2d(2,2) over the 28x28 image as a (14,28) averaging matrix A.
    A = np.zeros((14, 28), np.float32)
    for i in range(14):
        A[i, 2 * i] = 0.5
        A[i, 2 * i + 1] = 0.5
    # ReplicationPad1d((2,1)) as a (14,17) column-selection matrix R.
    R = np.zeros((14, 17), np.float32)
    for j in range(17):
        R[min(max(j - 2, 0), 13), j] = 1.0
    A = jnp.asarray(A)
    R = jnp.asarray(R)

    # y[b] = A @ img[b] @ (A.T @ R @ W1.T)  ==>  flat: x784 @ kron(A.T, M)
    M = A.T @ R @ raw["w1"].T                       # (28, 14)
    w_head = jnp.kron(A.T, M)                       # (784, 196), col = 14*i + k
    b_head = jnp.tile(raw["b1"], 14)                # (196,), b[14*i + k] = b1[k]

    # BatchNorm (eval) affines.
    s1 = raw["bn1_g"] / jnp.sqrt(raw["bn1_rv"] + EPS)
    t1 = raw["bn1_b"] - raw["bn1_rm"] * s1
    s1f = jnp.repeat(s1, 14)                        # (196,), channel i over k
    t1f = jnp.repeat(t1, 14)
    s2 = raw["bn2_g"] / jnp.sqrt(raw["bn2_rv"] + EPS)
    t2 = raw["bn2_b"] - raw["bn2_rm"] * s2

    # Fold BN affines exactly into the next linear layer (all in f32).
    w2t = raw["w2"].T                               # (196, 400)
    w2f = s1f[:, None] * w2t
    b2f = raw["b2"] + t1f @ w2t
    w4t = raw["w4"].T                               # (800, 200)
    w4f = s2[:, None] * w4t
    b4f = raw["b4"] + t2 @ w4t

    # Only the logits get lane padding (10 -> 128) for a lane-dense store.
    w6 = jnp.pad(raw["w6"].T, ((0, 0), (0, 128 - 10)))
    b6 = jnp.pad(raw["b6"], (0, 128 - 10))

    def W(w):                                       # matmul weights -> bf16
        return w.astype(jnp.bfloat16)

    def Bv(v):                                      # biases -> f32 row vectors
        return v[None, :].astype(jnp.float32)

    kp = (
        W(w_head), Bv(b_head),
        W(w2f), Bv(b2f),
        W(raw["w3"].T), Bv(raw["b3"]),
        W(w4f), Bv(b4f),
        W(raw["w5"].T), Bv(raw["b5"]),
        W(w6), Bv(b6),
    )
    return tuple(jax.device_put(a) for a in kp)


# --------------------------------------------------------------------------
# Forward pass (single pallas_call)
# --------------------------------------------------------------------------
@jax.jit
def forward(x, kp):
    B = x.shape[0]
    # Balanced, sublane-aligned batch tiles capped at 512 rows: small batches
    # stay one grid step; large batches split into evenly-sized tiles (no
    # nearly-dead last tile) across the "parallel" grid axis.
    BT_CAP = 512
    n_tiles = max(1, -(-B // BT_CAP))
    bt = _round_up(-(-B // n_tiles), 8)
    Bp = bt * n_tiles
    if Bp != B:
        x = jnp.pad(x, ((0, Bp - B), (0, 0)))

    in_specs = [pl.BlockSpec((bt, 784), lambda i: (i, 0))]
    # Weights/biases: full-array blocks at natural (unpadded) shapes with a
    # constant index_map, so they stay VMEM-resident across grid steps.
    in_specs += [pl.BlockSpec(a.shape, lambda i: (0, 0)) for a in kp]

    out = pl.pallas_call(
        fused_kernel,
        out_shape=jax.ShapeDtypeStruct((Bp, 128), jnp.float32),
        grid=(n_tiles,),
        in_specs=in_specs,
        out_specs=pl.BlockSpec((bt, 128), lambda i: (i, 0)),
        compiler_params=pltpu.CompilerParams(
            dimension_semantics=("parallel",),
            vmem_limit_bytes=24 * 1024 * 1024),
    )(x, *kp)
    return out[:B, :10]


# --------------------------------------------------------------------------
# Pure-JAX reference (follows the PyTorch module op-for-op, f32 throughout)
# --------------------------------------------------------------------------
def reference(x, p):
    B = x.shape[0]
    h = x.reshape(B, 28, 28)
    h = h.reshape(B, 14, 2, 14, 2).mean(axis=(2, 4))                 # AvgPool2d(2,2)
    h = jnp.pad(h, ((0, 0), (0, 0), (2, 1)), mode="edge")            # ReplicationPad1d((2,1))
    h = jax.nn.relu(jnp.einsum("bik,ok->bio", h, p["w1"]) + p["b1"])
    h = ((h - p["bn1_rm"][None, :, None])
         / jnp.sqrt(p["bn1_rv"][None, :, None] + EPS)
         * p["bn1_g"][None, :, None] + p["bn1_b"][None, :, None])
    h = h.reshape(B, 196)
    h = jax.nn.relu(h @ p["w2"].T + p["b2"])
    h = jax.nn.relu(h @ p["w3"].T + p["b3"])
    h = (h - p["bn2_rm"]) / jnp.sqrt(p["bn2_rv"] + EPS) * p["bn2_g"] + p["bn2_b"]
    h = jax.nn.relu(h @ p["w4"].T + p["b4"])
    h = jax.nn.relu(h @ p["w5"].T + p["b5"])
    return h @ p["w6"].T + p["b6"]


if __name__ == "__main__":
    B = 8
    key = jax.random.PRNGKey(0)
    x = jax.random.normal(key, (B, 784), jnp.float32)

    raw = init_raw_params(0)
    kp = prepare_params(raw)

    out = jax.block_until_ready(forward(x, kp))
    assert out.shape == (B, 10)

    ref = jax.block_until_ready(reference(x, raw))
    np.testing.assert_allclose(np.asarray(out), np.asarray(ref), rtol=1e-2, atol=1e-2)
    print("KERNEL_OK")
</pallas_src>

<mosaic_0001>
module attributes {stable_mosaic.version = 11 : i64} {
  func.func @fused_kernel(%arg0: i32, %arg1: memref<8x784xf32, #tpu.memory_space<vmem>>, %arg2: memref<784x196xbf16, #tpu.memory_space<vmem>>, %arg3: memref<1x196xf32, #tpu.memory_space<vmem>>, %arg4: memref<196x400xbf16, #tpu.memory_space<vmem>>, %arg5: memref<1x400xf32, #tpu.memory_space<vmem>>, %arg6: memref<400x800xbf16, #tpu.memory_space<vmem>>, %arg7: memref<1x800xf32, #tpu.memory_space<vmem>>, %arg8: memref<800x200xbf16, #tpu.memory_space<vmem>>, %arg9: memref<1x200xf32, #tpu.memory_space<vmem>>, %arg10: memref<200x50xbf16, #tpu.memory_space<vmem>>, %arg11: memref<1x50xf32, #tpu.memory_space<vmem>>, %arg12: memref<50x128xbf16, #tpu.memory_space<vmem>>, %arg13: memref<1x128xf32, #tpu.memory_space<vmem>>, %arg14: memref<8x128xf32, #tpu.memory_space<vmem>>) attributes {dimension_semantics = [#tpu.dimension_semantics<parallel>], iteration_bounds = array<i64: 1>, scalar_prefetch = 0 : i64, scratch_operands = 0 : i64, tpu.core_type = #tpu.core_type<tc>, window_params = [{transform_indices = @transform_0, window_bounds = array<i64: 8, 784>}, {pipeline_mode = #tpu.pipeline_mode<synchronous>, transform_indices = @transform_1, window_bounds = array<i64: 784, 196>}, {pipeline_mode = #tpu.pipeline_mode<synchronous>, transform_indices = @transform_2, window_bounds = array<i64: 1, 196>}, {pipeline_mode = #tpu.pipeline_mode<synchronous>, transform_indices = @transform_3, window_bounds = array<i64: 196, 400>}, {pipeline_mode = #tpu.pipeline_mode<synchronous>, transform_indices = @transform_4, window_bounds = array<i64: 1, 400>}, {pipeline_mode = #tpu.pipeline_mode<synchronous>, transform_indices = @transform_5, window_bounds = array<i64: 400, 800>}, {pipeline_mode = #tpu.pipeline_mode<synchronous>, transform_indices = @transform_6, window_bounds = array<i64: 1, 800>}, {pipeline_mode = #tpu.pipeline_mode<synchronous>, transform_indices = @transform_7, window_bounds = array<i64: 800, 200>}, {pipeline_mode = #tpu.pipeline_mode<synchronous>, transform_indices = @transform_8, window_bounds = array<i64: 1, 200>}, {pipeline_mode = #tpu.pipeline_mode<synchronous>, transform_indices = @transform_9, window_bounds = array<i64: 200, 50>}, {pipeline_mode = #tpu.pipeline_mode<synchronous>, transform_indices = @transform_10, window_bounds = array<i64: 1, 50>}, {pipeline_mode = #tpu.pipeline_mode<synchronous>, transform_indices = @transform_11, window_bounds = array<i64: 50, 128>}, {pipeline_mode = #tpu.pipeline_mode<synchronous>, transform_indices = @transform_12, window_bounds = array<i64: 1, 128>}, {transform_indices = @transform_13, window_bounds = array<i64: 8, 128>}]} {
    %c0 = arith.constant 0 : index
    %c0_0 = arith.constant 0 : index
    %0 = vector.load %arg1[%c0, %c0_0] : memref<8x784xf32, #tpu.memory_space<vmem>>, vector<8x784xf32>
    %1 = arith.truncf %0 : vector<8x784xf32> to vector<8x784xbf16>
    %c0_1 = arith.constant 0 : index
    %c0_2 = arith.constant 0 : index
    %2 = vector.load %arg2[%c0_1, %c0_2] : memref<784x196xbf16, #tpu.memory_space<vmem>>, vector<784x196xbf16>
    %cst = arith.constant dense<0.000000e+00> : vector<8x196xf32>
    %3 = tpu.matmul %1, %2, %cst {dimension_numbers = #tpu.dot_dimension_numbers<[1], [0], [0], [1], [0, 0, 1, 1], [], []>} : vector<8x784xbf16>, vector<784x196xbf16>, vector<8x196xf32> -> vector<8x196xf32>
    %c0_3 = arith.constant 0 : index
    %c0_4 = arith.constant 0 : index
    %4 = vector.load %arg3[%c0_3, %c0_4] : memref<1x196xf32, #tpu.memory_space<vmem>>, vector<1x196xf32>
    %5 = vector.broadcast %4 : vector<1x196xf32> to vector<8x196xf32>
    %6 = arith.addf %3, %5 : vector<8x196xf32>
    %cst_5 = arith.constant 0.000000e+00 : f32
    %7 = vector.broadcast %cst_5 : f32 to vector<8x196xf32>
    %8 = arith.maximumf %6, %7 : vector<8x196xf32>
    %9 = arith.truncf %8 : vector<8x196xf32> to vector<8x196xbf16>
    %c0_6 = arith.constant 0 : index
    %c0_7 = arith.constant 0 : index
    %10 = vector.load %arg4[%c0_6, %c0_7] : memref<196x400xbf16, #tpu.memory_space<vmem>>, vector<196x400xbf16>
    %cst_8 = arith.constant dense<0.000000e+00> : vector<8x400xf32>
    %11 = tpu.matmul %9, %10, %cst_8 {dimension_numbers = #tpu.dot_dimension_numbers<[1], [0], [0], [1], [0, 0, 1, 1], [], []>} : vector<8x196xbf16>, vector<196x400xbf16>, vector<8x400xf32> -> vector<8x400xf32>
    %c0_9 = arith.constant 0 : index
    %c0_10 = arith.constant 0 : index
    %12 = vector.load %arg5[%c0_9, %c0_10] : memref<1x400xf32, #tpu.memory_space<vmem>>, vector<1x400xf32>
    %13 = vector.broadcast %12 : vector<1x400xf32> to vector<8x400xf32>
    %14 = arith.addf %11, %13 : vector<8x400xf32>
    %cst_11 = arith.constant 0.000000e+00 : f32
    %15 = vector.broadcast %cst_11 : f32 to vector<8x400xf32>
    %16 = arith.maximumf %14, %15 : vector<8x400xf32>
    %17 = arith.truncf %16 : vector<8x400xf32> to vector<8x400xbf16>
    %c0_12 = arith.constant 0 : index
    %c0_13 = arith.constant 0 : index
    %18 = vector.load %arg6[%c0_12, %c0_13] : memref<400x800xbf16, #tpu.memory_space<vmem>>, vector<400x800xbf16>
    %cst_14 = arith.constant dense<0.000000e+00> : vector<8x800xf32>
    %19 = tpu.matmul %17, %18, %cst_14 {dimension_numbers = #tpu.dot_dimension_numbers<[1], [0], [0], [1], [0, 0, 1, 1], [], []>} : vector<8x400xbf16>, vector<400x800xbf16>, vector<8x800xf32> -> vector<8x800xf32>
    %c0_15 = arith.constant 0 : index
    %c0_16 = arith.constant 0 : index
    %20 = vector.load %arg7[%c0_15, %c0_16] : memref<1x800xf32, #tpu.memory_space<vmem>>, vector<1x800xf32>
    %21 = vector.broadcast %20 : vector<1x800xf32> to vector<8x800xf32>
    %22 = arith.addf %19, %21 : vector<8x800xf32>
    %cst_17 = arith.constant 0.000000e+00 : f32
    %23 = vector.broadcast %cst_17 : f32 to vector<8x800xf32>
    %24 = arith.maximumf %22, %23 : vector<8x800xf32>
    %25 = arith.truncf %24 : vector<8x800xf32> to vector<8x800xbf16>
    %c0_18 = arith.constant 0 : index
    %c0_19 = arith.constant 0 : index
    %26 = vector.load %arg8[%c0_18, %c0_19] : memref<800x200xbf16, #tpu.memory_space<vmem>>, vector<800x200xbf16>
    %cst_20 = arith.constant dense<0.000000e+00> : vector<8x200xf32>
    %27 = tpu.matmul %25, %26, %cst_20 {dimension_numbers = #tpu.dot_dimension_numbers<[1], [0], [0], [1], [0, 0, 1, 1], [], []>} : vector<8x800xbf16>, vector<800x200xbf16>, vector<8x200xf32> -> vector<8x200xf32>
    %c0_21 = arith.constant 0 : index
    %c0_22 = arith.constant 0 : index
    %28 = vector.load %arg9[%c0_21, %c0_22] : memref<1x200xf32, #tpu.memory_space<vmem>>, vector<1x200xf32>
    %29 = vector.broadcast %28 : vector<1x200xf32> to vector<8x200xf32>
    %30 = arith.addf %27, %29 : vector<8x200xf32>
    %cst_23 = arith.constant 0.000000e+00 : f32
    %31 = vector.broadcast %cst_23 : f32 to vector<8x200xf32>
    %32 = arith.maximumf %30, %31 : vector<8x200xf32>
    %33 = arith.truncf %32 : vector<8x200xf32> to vector<8x200xbf16>
    %c0_24 = arith.constant 0 : index
    %c0_25 = arith.constant 0 : index
    %34 = vector.load %arg10[%c0_24, %c0_25] : memref<200x50xbf16, #tpu.memory_space<vmem>>, vector<200x50xbf16>
    %cst_26 = arith.constant dense<0.000000e+00> : vector<8x50xf32>
    %35 = tpu.matmul %33, %34, %cst_26 {dimension_numbers = #tpu.dot_dimension_numbers<[1], [0], [0], [1], [0, 0, 1, 1], [], []>} : vector<8x200xbf16>, vector<200x50xbf16>, vector<8x50xf32> -> vector<8x50xf32>
    %c0_27 = arith.constant 0 : index
    %c0_28 = arith.constant 0 : index
    %36 = vector.load %arg11[%c0_27, %c0_28] : memref<1x50xf32, #tpu.memory_space<vmem>>, vector<1x50xf32>
    %37 = vector.broadcast %36 : vector<1x50xf32> to vector<8x50xf32>
    %38 = arith.addf %35, %37 : vector<8x50xf32>
    %cst_29 = arith.constant 0.000000e+00 : f32
    %39 = vector.broadcast %cst_29 : f32 to vector<8x50xf32>
    %40 = arith.maximumf %38, %39 : vector<8x50xf32>
    %41 = arith.truncf %40 : vector<8x50xf32> to vector<8x50xbf16>
    %c0_30 = arith.constant 0 : index
    %c0_31 = arith.constant 0 : index
    %42 = vector.load %arg12[%c0_30, %c0_31] : memref<50x128xbf16, #tpu.memory_space<vmem>>, vector<50x128xbf16>
    %cst_32 = arith.constant dense<0.000000e+00> : vector<8x128xf32>
    %43 = tpu.matmul %41, %42, %cst_32 {dimension_numbers = #tpu.dot_dimension_numbers<[1], [0], [0], [1], [0, 0, 1, 1], [], []>} : vector<8x50xbf16>, vector<50x128xbf16>, vector<8x128xf32> -> vector<8x128xf32>
    %c0_33 = arith.constant 0 : index
    %c0_34 = arith.constant 0 : index
    %44 = vector.load %arg13[%c0_33, %c0_34] : memref<1x128xf32, #tpu.memory_space<vmem>>, vector<1x128xf32>
    %45 = vector.broadcast %44 : vector<1x128xf32> to vector<8x128xf32>
    %46 = arith.addf %43, %45 : vector<8x128xf32>
    %c0_35 = arith.constant 0 : index
    %c0_36 = arith.constant 0 : index
    %47 = vector.load %arg14[%c0_35, %c0_36] : memref<8x128xf32, #tpu.memory_space<vmem>>, vector<8x128xf32>
    tpu.vector_store %arg14[%c0_35, %c0_36], %46 {strides = array<i32>} : memref<8x128xf32, #tpu.memory_space<vmem>>, vector<8x128xf32>,
    return
  }
  func.func @transform_0(%arg0: i32) -> (i32, i32) {
    %c0_i32 = arith.constant 0 : i32
    %c0_i32_0 = arith.constant 0 : i32
    return %arg0, %c0_i32 : i32, i32
  }
  func.func @transform_1(%arg0: i32) -> (i32, i32) {
    %c0_i32 = arith.constant 0 : i32
    %c0_i32_0 = arith.constant 0 : i32
    %c0_i32_1 = arith.constant 0 : i32
    return %c0_i32, %c0_i32_0 : i32, i32
  }
  func.func @transform_2(%arg0: i32) -> (i32, i32) {
    %c0_i32 = arith.constant 0 : i32
    %c0_i32_0 = arith.constant 0 : i32
    %c0_i32_1 = arith.constant 0 : i32
    return %c0_i32, %c0_i32_0 : i32, i32
  }
  func.func @transform_3(%arg0: i32) -> (i32, i32) {
    %c0_i32 = arith.constant 0 : i32
    %c0_i32_0 = arith.constant 0 : i32
    %c0_i32_1 = arith.constant 0 : i32
    return %c0_i32, %c0_i32_0 : i32, i32
  }
  func.func @transform_4(%arg0: i32) -> (i32, i32) {
    %c0_i32 = arith.constant 0 : i32
    %c0_i32_0 = arith.constant 0 : i32
    %c0_i32_1 = arith.constant 0 : i32
    return %c0_i32, %c0_i32_0 : i32, i32
  }
  func.func @transform_5(%arg0: i32) -> (i32, i32) {
    %c0_i32 = arith.constant 0 : i32
    %c0_i32_0 = arith.constant 0 : i32
    %c0_i32_1 = arith.constant 0 : i32
    return %c0_i32, %c0_i32_0 : i32, i32
  }
  func.func @transform_6(%arg0: i32) -> (i32, i32) {
    %c0_i32 = arith.constant 0 : i32
    %c0_i32_0 = arith.constant 0 : i32
    %c0_i32_1 = arith.constant 0 : i32
    return %c0_i32, %c0_i32_0 : i32, i32
  }
  func.func @transform_7(%arg0: i32) -> (i32, i32) {
    %c0_i32 = arith.constant 0 : i32
    %c0_i32_0 = arith.constant 0 : i32
    %c0_i32_1 = arith.constant 0 : i32
    return %c0_i32, %c0_i32_0 : i32, i32
  }
  func.func @transform_8(%arg0: i32) -> (i32, i32) {
    %c0_i32 = arith.constant 0 : i32
    %c0_i32_0 = arith.constant 0 : i32
    %c0_i32_1 = arith.constant 0 : i32
    return %c0_i32, %c0_i32_0 : i32, i32
  }
  func.func @transform_9(%arg0: i32) -> (i32, i32) {
    %c0_i32 = arith.constant 0 : i32
    %c0_i32_0 = arith.constant 0 : i32
    %c0_i32_1 = arith.constant 0 : i32
    return %c0_i32, %c0_i32_0 : i32, i32
  }
  func.func @transform_10(%arg0: i32) -> (i32, i32) {
    %c0_i32 = arith.constant 0 : i32
    %c0_i32_0 = arith.constant 0 : i32
    %c0_i32_1 = arith.constant 0 : i32
    return %c0_i32, %c0_i32_0 : i32, i32
  }
  func.func @transform_11(%arg0: i32) -> (i32, i32) {
    %c0_i32 = arith.constant 0 : i32
    %c0_i32_0 = arith.constant 0 : i32
    %c0_i32_1 = arith.constant 0 : i32
    return %c0_i32, %c0_i32_0 : i32, i32
  }
  func.func @transform_12(%arg0: i32) -> (i32, i32) {
    %c0_i32 = arith.constant 0 : i32
    %c0_i32_0 = arith.constant 0 : i32
    %c0_i32_1 = arith.constant 0 : i32
    return %c0_i32, %c0_i32_0 : i32, i32
  }
  func.func @transform_13(%arg0: i32) -> (i32, i32) {
    %c0_i32 = arith.constant 0 : i32
    %c0_i32_0 = arith.constant 0 : i32
    return %arg0, %c0_i32 : i32, i32
  }
}

</mosaic_0001>

<bundles_post_ra>
// kernel: forward.1
= control target key start
LH: loop header
LB: loop body
LE: loop exit
PB: predicated region body
PF: predicated region fallthrough
CT: control target
= control target key end

     0   :  { %vm660_vm0 = vcmask 130048   ;;  %s6539_s0 = inlined_call_operand.vmem [shape: f32[8,784], index: 0, kind: input, shape index: {}]   ;;  %s6540_s1 = inlined_call_operand.vmem [shape: bf16[784,196], index: 1, kind: input, shape index: {}]   ;;  %s6541_s2 = inlined_call_operand.vmem [shape: f32[1,196], index: 2, kind: input, shape index: {}]   ;;  %s6542_s3 = inlined_call_operand.vmem [shape: bf16[196,400], index: 3, kind: input, shape index: {}]   ;;  %s6543_s4 = inlined_call_operand.vmem [shape: f32[1,400], index: 4, kind: input, shape index: {}]   ;;  %s6544_s5 = inlined_call_operand.vmem [shape: bf16[400,800], index: 5, kind: input, shape index: {}]   ;;  %s6545_s6 = inlined_call_operand.vmem [shape: f32[1,800], index: 6, kind: input, shape index: {}]   ;;  %s6546_s7 = inlined_call_operand.vmem [shape: bf16[800,200], index: 7, kind: input, shape index: {}]   ;;  %s6547_s8 = inlined_call_operand.vmem [shape: f32[1,200], index: 8, kind: input, shape index: {}]   ;;  %s6548_s9 = inlined_call_operand.vmem [shape: bf16[200,50], index: 9, kind: input, shape index: {}]   ;;  %s6549_s10 = inlined_call_operand.vmem [shape: f32[1,50], index: 10, kind: input, shape index: {}]   ;;  %s6550_s11 = inlined_call_operand.vmem [shape: bf16[50,128], index: 11, kind: input, shape index: {}]   ;;  %s6551_s12 = inlined_call_operand.vmem [shape: f32[1,128], index: 12, kind: input, shape index: {}]   ;;  %s6552_s13 = inlined_call_operand.hbm [shape: f32[8,128], index: 13, kind: output, shape index: {}]  }
   0x1   :  { %v4323_v0 = vld [vmem:[%s6540_s1 + $0x104] ss:$8 sps:$4 sm:$0xff]   ;;  %v4325_v1 = vld [vmem:[%s6540_s1 + $0x100] ss:$8 sps:$4 sm:$0xff]   ;;  %v4326_v2 = vld [vmem:[%s6540_s1 + $0x114] ss:$8 sps:$4 sm:$0xff]  }
   0x2   :  { %705 = vmatprep.subr.bf16.mxu0 %v4323_v0  ;;  %v4328_v3 = vld [vmem:[%s6540_s1 + $0x110] ss:$8 sps:$4 sm:$0xff]   ;;  %v4329_v4 = vld [vmem:[%s6540_s1 + $0x124] ss:$8 sps:$4 sm:$0xff]   ;;  %v4331_v5 = vld [vmem:[%s6540_s1 + $0x120] ss:$8 sps:$4 sm:$0xff]  }
   0x3   :  { %706 = vmatpush1.bf16.msra.mxu0 %v4325_v1  ;;  %v4332_v6 = vld [vmem:[%s6540_s1 + $0x134] ss:$8 sps:$4 sm:$0xff]   ;;  %v4334_v7 = vld [vmem:[%s6540_s1 + $0x130] ss:$8 sps:$4 sm:$0xff]   ;;  %v4335_v8 = vld [vmem:[%s6540_s1 + $0x144] ss:$8 sps:$4 sm:$0xff]  }
   0x4   :  { %707 = vmatprep.subr.bf16.mxu0 %v4326_v2  ;;  %v4337_v9 = vld [vmem:[%s6540_s1 + $0x140] ss:$8 sps:$4 sm:$0xff]   ;;  %v4338_v10 = vld [vmem:[%s6540_s1 + $0x154] ss:$8 sps:$4 sm:$0xff]   ;;  %v4340_v11 = vld [vmem:[%s6540_s1 + $0x150] ss:$8 sps:$4 sm:$0xff]  }
   0x5   :  { %v4341_v12 = vld [vmem:[%s6540_s1 + $0x164] ss:$8 sps:$4 sm:$0xff]   ;;  %v49_v13 = vld [vmem:[%s6539_s0 + $0x18] sm:$0xff]  ;;  %v4343_v15 = vld [vmem:[%s6540_s1 + $0x160] ss:$8 sps:$4 sm:$0xff]  }
   0x6   :  { %v56_v14 = vpack.c.bf16 %v49_v13, %v49_v13  ;;  %v4344_v16 = vld [vmem:[%s6540_s1 + $0x174] ss:$8 sps:$4 sm:$0xff]   ;;  %v4377_v17 = vld [vmem:[%s6540_s1 + $0x4] ss:$8 sps:$4 sm:$0xff]   ;;  %v4379_v18 = vld [vmem:[%s6540_s1] ss:$8 sps:$4 sm:$0xff]  }
   0x7   :  { %708 = vmatpush1.bf16.msra.mxu0 %v4328_v3  ;;  %v4346_v19 = vld [vmem:[%s6540_s1 + $0x170] ss:$8 sps:$4 sm:$0xff]   ;;  %v4347_v20 = vld [vmem:[%s6540_s1 + $0x184] ss:$8 sps:$4 sm:$0xff]   ;;  %664 = vmatprep.subr.bf16.mxu1 %v4377_v17  ;;  %v4383_v21 = vld [vmem:[%s6540_s1 + $0x14] ss:$8 sps:$4 sm:$0xff]  }
   0x8   :  { %709 = vmatprep.subr.bf16.mxu0 %v4329_v4  ;;  %737 = vmatprep.mubr.bf16.mxu0 %v56_v14  ;;  %v4385_v22 = vld [vmem:[%s6540_s1 + $0x10] ss:$8 sps:$4 sm:$0xff]   ;;  %v4389_v23 = vld [vmem:[%s6540_s1 + $0x24] ss:$8 sps:$4 sm:$0xff]   ;;  %v4349_v24 = vld [vmem:[%s6540_s1 + $0x180] ss:$8 sps:$4 sm:$0xff]  }
   0x9   :  { %665 = vmatpush1.bf16.msra.mxu1 %v4379_v18  ;;  %v4350_v25 = vld [vmem:[%s6540_s1 + $0x194] ss:$8 sps:$4 sm:$0xff]   ;;  %v4391_v26 = vld [vmem:[%s6540_s1 + $0x20] ss:$8 sps:$4 sm:$0xff]   ;;  %v4352_v28 = vld [vmem:[%s6540_s1 + $0x190] ss:$8 sps:$4 sm:$0xff]  }
   0xa   :  { %666 = vmatprep.subr.bf16.mxu1 %v4383_v21  ;;  %v4395_v27 = vld [vmem:[%s6540_s1 + $0x34] ss:$8 sps:$4 sm:$0xff]   ;;  %v4353_v29 = vld [vmem:[%s6540_s1 + $0x1a4] ss:$8 sps:$4 sm:$0xff]   ;;  %v4397_v30 = vld [vmem:[%s6540_s1 + $0x30] ss:$8 sps:$4 sm:$0xff]  }
   0xb   :  { %710 = vmatpush1.bf16.msra.mxu0 %v4331_v5  ;;  %v4401_v31 = vld [vmem:[%s6540_s1 + $0x44] ss:$8 sps:$4 sm:$0xff]   ;;  %v4355_v32 = vld [vmem:[%s6540_s1 + $0x1a0] ss:$8 sps:$4 sm:$0xff]   ;;  %v4356_v33 = vld [vmem:[%s6540_s1 + $0x1b4] ss:$8 sps:$4 sm:$0xff]  }
   0xc   :  { %711 = vmatprep.subr.bf16.mxu0 %v4332_v6  ;;  %v4403_v34 = vld [vmem:[%s6540_s1 + $0x40] ss:$8 sps:$4 sm:$0xff]   ;;  %v4407_v35 = vld [vmem:[%s6540_s1 + $0x54] ss:$8 sps:$4 sm:$0xff]   ;;  %v4358_v36 = vld [vmem:[%s6540_s1 + $0x1b0] ss:$8 sps:$4 sm:$0xff]  }
   0xd   :  { %667 = vmatpush1.bf16.msra.mxu1 %v4385_v22  ;;  %v4359_v37 = vld [vmem:[%s6540_s1 + $0x1c4] ss:$8 sps:$4 sm:$0xff]   ;;  %v4409_v38 = vld [vmem:[%s6540_s1 + $0x50] ss:$8 sps:$4 sm:$0xff]   ;;  %v4361_v40 = vld [vmem:[%s6540_s1 + $0x1c0] ss:$8 sps:$4 sm:$0xff]  }
   0xe   :  { %668 = vmatprep.subr.bf16.mxu1 %v4389_v23  ;;  %v4413_v39 = vld [vmem:[%s6540_s1 + $0x64] ss:$8 sps:$4 sm:$0xff]   ;;  %v4362_v41 = vld [vmem:[%s6540_s1 + $0x1d4] ss:$8 sps:$4 sm:$0xff]   ;;  %v4415_v42 = vld [vmem:[%s6540_s1 + $0x60] ss:$8 sps:$4 sm:$0xff]  }
   0xf   :  { %712 = vmatpush1.bf16.msra.mxu0 %v4334_v7  ;;  %v4419_v43 = vld [vmem:[%s6540_s1 + $0x74] ss:$8 sps:$4 sm:$0xff]   ;;  %v4364_v44 = vld [vmem:[%s6540_s1 + $0x1d0] ss:$8 sps:$4 sm:$0xff]   ;;  %v4365_v45 = vld [vmem:[%s6540_s1 + $0x1e4] ss:$8 sps:$4 sm:$0xff]  }
  0x10   :  { %713 = vmatprep.subr.bf16.mxu0 %v4335_v8  ;;  %v4421_v46 = vld [vmem:[%s6540_s1 + $0x70] ss:$8 sps:$4 sm:$0xff]   ;;  %v4425_v47 = vld [vmem:[%s6540_s1 + $0x84] ss:$8 sps:$4 sm:$0xff]   ;;  %v4367_v48 = vld [vmem:[%s6540_s1 + $0x1e0] ss:$8 sps:$4 sm:$0xff]  }
  0x11   :  { %669 = vmatpush1.bf16.msra.mxu1 %v4391_v26  ;;  %v4368_v49 = vld [vmem:[%s6540_s1 + $0x1f4] ss:$8 sps:$4 sm:$0xff]   ;;  %v4427_v50 = vld [vmem:[%s6540_s1 + $0x80] ss:$8 sps:$4 sm:$0xff]   ;;  %v4370_v52 = vld [vmem:[%s6540_s1 + $0x1f0] ss:$8 sps:$4 sm:$0xff]  }
  0x12   :  { %670 = vmatprep.subr.bf16.mxu1 %v4395_v27  ;;  %v4431_v51 = vld [vmem:[%s6540_s1 + $0x94] ss:$8 sps:$4 sm:$0xff]   ;;  %v4373_v54 = vld [vmem:[%s6540_s1 + $0x204] ss:$8 sps:$4 sm:$0xff]   ;;  %v4433_v55 = vld [vmem:[%s6540_s1 + $0x90] ss:$8 sps:$4 sm:$0xff]  }
  0x13   :  { %714 = vmatpush1.bf16.msra.mxu0 %v4337_v9  ;;  %v48_v53 = vld [vmem:[%s6539_s0 + $0x10] sm:$0xff]  ;;  %v4437_v56 = vld [vmem:[%s6540_s1 + $0xa4] ss:$8 sps:$4 sm:$0xff]   ;;  %v4371_v58 = vld [vmem:[%s6540_s1 + $0x200] ss:$8 sps:$4 sm:$0xff]  }
  0x14   :  { %715 = vmatprep.subr.bf16.mxu0 %v4338_v10  ;;  %v55_v57 = vpack.c.bf16 %v48_v53, %v48_v53  ;;  %v4376_v59 = vld [vmem:[%s6540_s1 + $0x214] ss:$8 sps:$4 sm:$0xff]   ;;  %v51_v60 = vld [vmem:[%s6539_s0 + $0x28] sm:$0xff]  ;;  %v4374_v1 = vld [vmem:[%s6540_s1 + $0x210] ss:$8 sps:$4 sm:$0xff]  }
  0x15   :  { %671 = vmatpush1.bf16.msra.mxu1 %v4397_v30  ;;  %v4439_v61 = vld [vmem:[%s6540_s1 + $0xa0] ss:$8 sps:$4 sm:$0xff]   ;;  %v58_v62 = vpack.c.bf16 %v51_v60, %v51_v60  ;;  %v4443_v63 = vld [vmem:[%s6540_s1 + $0xb4] ss:$8 sps:$4 sm:$0xff]   ;;  %v4382_v3 = vld [vmem:[%s6540_s1 + $0x224] ss:$8 sps:$4 sm:$0xff]  }
  0x16   :  { %672 = vmatprep.subr.bf16.mxu1 %v4401_v31  ;;  %v47_v0 = vld [vmem:[%s6539_s0 + $0x8] sm:$0xff]  ;;  %v4445_v4 = vld [vmem:[%s6540_s1 + $0xb0] ss:$8 sps:$4 sm:$0xff]   ;;  %v4388_v7 = vld [vmem:[%s6540_s1 + $0x234] ss:$8 sps:$4 sm:$0xff]  }
  0x17   :  { %716 = vmatpush1.bf16.msra.mxu0 %v4340_v11  ;;  %v54_v2 = vpack.c.bf16 %v47_v0, %v47_v0  ;;  %v4449_v5 = vld [vmem:[%s6540_s1 + $0xc4] ss:$8 sps:$4 sm:$0xff]   ;;  %v4380_v6 = vld [vmem:[%s6540_s1 + $0x220] ss:$8 sps:$4 sm:$0xff]   ;;  %v4455_v9 = vld [vmem:[%s6540_s1 + $0xd4] ss:$8 sps:$4 sm:$0xff]  }
  0x18   :  { %717 = vmatprep.subr.bf16.mxu0 %v4341_v12  ;;  %v4451_v8 = vld [vmem:[%s6540_s1 + $0xc0] ss:$8 sps:$4 sm:$0xff]   ;;  %v4386_v10 = vld [vmem:[%s6540_s1 + $0x230] ss:$8 sps:$4 sm:$0xff]   ;;  %v4394_v11 = vld [vmem:[%s6540_s1 + $0x244] ss:$8 sps:$4 sm:$0xff]  }
  0x19   :  { %673 = vmatpush1.bf16.msra.mxu1 %v4403_v34  ;;  %696 = vmatprep.mubr.bf16.mxu1 %v54_v2  ;;  %v4457_v12 = vld [vmem:[%s6540_s1 + $0xd0] ss:$8 sps:$4 sm:$0xff]   ;;  %v4461_v13 = vld [vmem:[%s6540_s1 + $0xe4] ss:$8 sps:$4 sm:$0xff]   ;;  %v4392_v14 = vld [vmem:[%s6540_s1 + $0x240] ss:$8 sps:$4 sm:$0xff]  }
  0x1a   :  { %674 = vmatprep.subr.bf16.mxu1 %v4407_v35  ;;  %v4398_v17 = vld [vmem:[%s6540_s1 + $0x250] ss:$8 sps:$4 sm:$0xff]   ;;  %v4467_v18 = vld [vmem:[%s6540_s1 + $0xf4] ss:$8 sps:$4 sm:$0xff]   ;;  %v46_v21 = vld [vmem:[%s6539_s0] sm:$0xff]  ;;  %v4987_v2 = vmov 0  }
  0x1b   :  { %718 = vmatpush1.bf16.msra.mxu0 %v4343_v15  ;;  %v4400_v15 = vld [vmem:[%s6540_s1 + $0x254] ss:$8 sps:$4 sm:$0xff]   ;;  %v4404_v23 = vld [vmem:[%s6540_s1 + $0x260] ss:$8 sps:$4 sm:$0xff]   ;;  %v53_v26 = vpack.c.bf16 %v46_v21, %v46_v21  ;;  %v4454_v53 = vld [vmem:[%s6540_s1 + $0x2e4] ss:$8 sps:$4 sm:$0xff]  }
  0x1c   :  { %719 = vmatprep.subr.bf16.mxu0 %v4344_v16  ;;  %v4463_v16 = vld [vmem:[%s6540_s1 + $0xe0] ss:$8 sps:$4 sm:$0xff]   ;;  %v4472_v22 = vld [vmem:[%s6542_s3 + $0x4] ss:$16 sps:$4 sm:$0xff]   ;;  %v4458_v60 = vld [vmem:[%s6540_s1 + $0x2f0] ss:$8 sps:$4 sm:$0xff]  }
  0x1d   :  { %675 = vmatpush1.bf16.msra.mxu1 %v4409_v38  ;;  %v4475_v27 = vld [vmem:[%s6542_s3 + $0x24] ss:$16 sps:$4 sm:$0xff]   ;;  %v4473_v30 = vld [vmem:[%s6542_s3 + $0x20] ss:$16 sps:$4 sm:$0xff]  }
  0x1e   :  { %676 = vmatprep.subr.bf16.mxu1 %v4413_v39  ;;  %v4478_v31 = vld [vmem:[%s6542_s3 + $0x44] ss:$16 sps:$4 sm:$0xff]   ;;  %v4476_v34 = vld [vmem:[%s6542_s3 + $0x40] ss:$16 sps:$4 sm:$0xff]  }
  0x1f   :  { %720 = vmatpush1.bf16.msra.mxu0 %v4346_v19  ;;  %v4406_v19 = vld [vmem:[%s6540_s1 + $0x264] ss:$8 sps:$4 sm:$0xff]   ;;  %v4479_v38 = vld [vmem:[%s6542_s3 + $0x60] ss:$16 sps:$4 sm:$0xff]  }
  0x20   :  { %721 = vmatprep.subr.bf16.mxu0 %v4347_v20  ;;  %v4469_v20 = vld [vmem:[%s6540_s1 + $0xf0] ss:$8 sps:$4 sm:$0xff]   ;;  %v4481_v35 = vld [vmem:[%s6542_s3 + $0x64] ss:$16 sps:$4 sm:$0xff]   ;;  %v4464_v0 = vld [vmem:[%s6540_s1 + $0x300] ss:$8 sps:$4 sm:$0xff]  }
  0x21   :  { %677 = vmatpush1.bf16.msra.mxu1 %v4415_v42  ;;  %v4484_v39 = vld [vmem:[%s6542_s3 + $0x84] ss:$16 sps:$4 sm:$0xff]   ;;  %v4482_v42 = vld [vmem:[%s6542_s3 + $0x80] ss:$16 sps:$4 sm:$0xff]  }
  0x22   :  { %678 = vmatprep.subr.bf16.mxu1 %v4419_v43  ;;  %v4487_v43 = vld [vmem:[%s6542_s3 + $0xa4] ss:$16 sps:$4 sm:$0xff]  }
  0x23   :  { %722 = vmatpush1.bf16.msra.mxu0 %v4349_v24  ;;  %v4412_v24 = vld [vmem:[%s6540_s1 + $0x274] ss:$8 sps:$4 sm:$0xff]  }
  0x24   :  { %723 = vmatprep.subr.bf16.mxu0 %v4350_v25  ;;  %v4470_v25 = vld [vmem:[%s6542_s3] ss:$16 sps:$4 sm:$0xff]  }
  0x25   :  { %679 = vmatpush1.bf16.msra.mxu1 %v4421_v46  ;;  %v4485_v46 = vld [vmem:[%s6542_s3 + $0xa0] ss:$16 sps:$4 sm:$0xff]  }
  0x26   :  { %680 = vmatprep.subr.bf16.mxu1 %v4425_v47  ;;  %v4490_v47 = vld [vmem:[%s6542_s3 + $0xc4] ss:$16 sps:$4 sm:$0xff]  }
  0x27   :  { %724 = vmatpush1.bf16.msra.mxu0 %v4352_v28  ;;  %v4410_v28 = vld [vmem:[%s6540_s1 + $0x270] ss:$8 sps:$4 sm:$0xff]  }
  0x28   :  { %725 = vmatprep.subr.bf16.mxu0 %v4353_v29  ;;  %v4418_v29 = vld [vmem:[%s6540_s1 + $0x284] ss:$8 sps:$4 sm:$0xff]  }
  0x29   :  { %681 = vmatpush1.bf16.msra.mxu1 %v4427_v50  ;;  %v4488_v50 = vld [vmem:[%s6542_s3 + $0xc0] ss:$16 sps:$4 sm:$0xff]  }
  0x2a   :  { %682 = vmatprep.subr.bf16.mxu1 %v4431_v51  ;;  %v4493_v51 = vld [vmem:[%s6542_s3 + $0xe4] ss:$16 sps:$4 sm:$0xff]  }
  0x2b   :  { %726 = vmatpush1.bf16.msra.mxu0 %v4355_v32  ;;  %v4416_v32 = vld [vmem:[%s6540_s1 + $0x280] ss:$8 sps:$4 sm:$0xff]  }
  0x2c   :  { %727 = vmatprep.subr.bf16.mxu0 %v4356_v33  ;;  %v4424_v33 = vld [vmem:[%s6540_s1 + $0x294] ss:$8 sps:$4 sm:$0xff]  }
  0x2d   :  { %683 = vmatpush1.bf16.msra.mxu1 %v4433_v55  ;;  %v4496_v55 = vld [vmem:[%s6542_s3 + $0x104] ss:$16 sps:$4 sm:$0xff]  }
  0x2e   :  { %684 = vmatprep.subr.bf16.mxu1 %v4437_v56  ;;  %v4452_v56 = vld [vmem:[%s6540_s1 + $0x2e0] ss:$8 sps:$4 sm:$0xff]  }
  0x2f   :  { %728 = vmatpush1.bf16.msra.mxu0 %v4358_v36  ;;  %v4422_v36 = vld [vmem:[%s6540_s1 + $0x290] ss:$8 sps:$4 sm:$0xff]  }
  0x30   :  { %729 = vmatprep.subr.bf16.mxu0 %v4359_v37  ;;  %v4430_v37 = vld [vmem:[%s6540_s1 + $0x2a4] ss:$8 sps:$4 sm:$0xff]  }
  0x31   :  { %685 = vmatpush1.bf16.msra.mxu1 %v4439_v61  ;;  %v50_v61 = vld [vmem:[%s6539_s0 + $0x20] sm:$0xff] }
  0x32   :  { %686 = vmatprep.subr.bf16.mxu1 %v4443_v63  ;;  %v4497_v63 = vld [vmem:[%s6542_s3 + $0x120] ss:$16 sps:$4 sm:$0xff]  }
  0x33   :  { %730 = vmatpush1.bf16.msra.mxu0 %v4361_v40  ;;  %v4428_v40 = vld [vmem:[%s6540_s1 + $0x2a0] ss:$8 sps:$4 sm:$0xff]  }
  0x34   :  { %731 = vmatprep.subr.bf16.mxu0 %v4362_v41  ;;  %v4436_v41 = vld [vmem:[%s6540_s1 + $0x2b4] ss:$8 sps:$4 sm:$0xff]  }
  0x35   :  { %687 = vmatpush1.bf16.msra.mxu1 %v4445_v4 }
  0x36   :  { %688 = vmatprep.subr.bf16.mxu1 %v4449_v5  ;;  %v4500_v5 = vld [vmem:[%s6542_s3 + $0x140] ss:$16 sps:$4 sm:$0xff]  }
  0x37   :  { %732 = vmatpush1.bf16.msra.mxu0 %v4364_v44  ;;  %v4434_v44 = vld [vmem:[%s6540_s1 + $0x2b0] ss:$8 sps:$4 sm:$0xff]  }
  0x38   :  { %733 = vmatprep.subr.bf16.mxu0 %v4365_v45  ;;  %v4442_v45 = vld [vmem:[%s6540_s1 + $0x2c4] ss:$8 sps:$4 sm:$0xff]  }
  0x39   :  { %689 = vmatpush1.bf16.msra.mxu1 %v4451_v8 }
  0x3a   :  { %690 = vmatprep.subr.bf16.mxu1 %v4455_v9 }
  0x3b   :  { %734 = vmatpush1.bf16.msra.mxu0 %v4367_v48  ;;  %v4440_v48 = vld [vmem:[%s6540_s1 + $0x2c0] ss:$8 sps:$4 sm:$0xff]  }
  0x3c   :  { %735 = vmatprep.subr.bf16.mxu0 %v4368_v49  ;;  %v4448_v49 = vld [vmem:[%s6540_s1 + $0x2d4] ss:$8 sps:$4 sm:$0xff]  }
  0x3d   :  { %691 = vmatpush1.bf16.msra.mxu1 %v4457_v12 }
  0x3e   :  { %692 = vmatprep.subr.bf16.mxu1 %v4461_v13 }
  0x3f   :  { %736 = vmatpush1.bf16.msra.mxu0 %v4370_v52  ;;  %v4446_v52 = vld [vmem:[%s6540_s1 + $0x2d0] ss:$8 sps:$4 sm:$0xff]  }
  0x40   :  { %746 = vmatprep.subr.bf16.mxu0 %v4373_v54  ;;  %v4491_v54 = vld [vmem:[%s6542_s3 + $0xe0] ss:$16 sps:$4 sm:$0xff]  }
  0x41   :  { %693 = vmatpush1.bf16.msra.mxu1 %v4463_v16 }
  0x42   :  { %738 = vmatmul.mubr.bf16.vlgmr.msra.gmra.mrb[0].mxu0 %v55_v57  ;;  %694 = vmatprep.subr.bf16.mxu1 %v4467_v18  ;;  %v4460_v57 = vld [vmem:[%s6540_s1 + $0x2f4] ss:$8 sps:$4 sm:$0xff]  }
  0x43   :  { %747 = vmatpush1.bf16.msra.mxu0 %v4371_v58  ;;  %778 = vmatprep.mubr.bf16.mxu0 %v58_v62  ;;  %v4494_v58 = vld [vmem:[%s6542_s3 + $0x100] ss:$16 sps:$4 sm:$0xff]   ;;  %v4466_v62 = vld [vmem:[%s6540_s1 + $0x304] ss:$8 sps:$4 sm:$0xff]  }
  0x44   :  { %748 = vmatprep.subr.bf16.mxu0 %v4376_v59  ;;  %v4499_v59 = vld [vmem:[%s6542_s3 + $0x124] ss:$16 sps:$4 sm:$0xff]  }
  0x45   :  { %695 = vmatpush1.bf16.msra.mxu1 %v4469_v20 }
  0x46   :  { %1171 = vmatprep.subr.bf16.mxu1 %v4472_v22 }
  0x47   :  { %749 = vmatpush1.bf16.msra.mxu0 %v4374_v1  ;;  %v57_v1 = vpack.c.bf16 %v50_v61, %v50_v61 }
  0x48   :  { %750 = vmatprep.subr.bf16.mxu0 %v4382_v3  ;;  %697 = vmatmul.mubr.bf16.vlgmr.msra.gmra.mrb[0].mxu1 %v53_v26  ;;  %v52_v3 = vld [vmem:[%s6539_s0 + $0x30] sm:$0xff] }
  0x49   :  { %1172 = vmatpush1.bf16.msra.mxu1 %v4470_v25  ;;  %v59_v4 = vpack.c.bf16 %v52_v3, %v52_v3 }
  0x4a   :  { %1173 = vmatprep.subr.bf16.mxu1 %v4475_v27 }
  0x4b   :  { %751 = vmatpush1.bf16.msra.mxu0 %v4380_v6  ;;  %v4502_v6 = vld [vmem:[%s6542_s3 + $0x144] ss:$16 sps:$4 sm:$0xff]  }
  0x4c   :  { %752 = vmatprep.subr.bf16.mxu0 %v4388_v7 }
  0x4d   :  { %1174 = vmatpush1.bf16.msra.mxu1 %v4473_v30 }
  0x4e   :  { %1175 = vmatprep.subr.bf16.mxu1 %v4478_v31 }
  0x4f   :  { %753 = vmatpush1.bf16.msra.mxu0 %v4386_v10 }
  0x50   :  { %754 = vmatprep.subr.bf16.mxu0 %v4394_v11 }
  0x51   :  { %1176 = vmatpush1.bf16.msra.mxu1 %v4476_v34 }
  0x52   :  { %1177 = vmatprep.subr.bf16.mxu1 %v4481_v35 }
  0x53   :  { %755 = vmatpush1.bf16.msra.mxu0 %v4392_v14 }
  0x54   :  { %756 = vmatprep.subr.bf16.mxu0 %v4400_v15 }
  0x55   :  { %1178 = vmatpush1.bf16.msra.mxu1 %v4479_v38 }
  0x56   :  { %1179 = vmatprep.subr.bf16.mxu1 %v4484_v39 }
  0x57   :  { %757 = vmatpush1.bf16.msra.mxu0 %v4398_v17 }
  0x58   :  { %758 = vmatprep.subr.bf16.mxu0 %v4406_v19 }
  0x59   :  { %1180 = vmatpush1.bf16.msra.mxu1 %v4482_v42 }
  0x5a   :  { %1181 = vmatprep.subr.bf16.mxu1 %v4487_v43 }
  0x5b   :  { %759 = vmatpush1.bf16.msra.mxu0 %v4404_v23 }
  0x5c   :  { %760 = vmatprep.subr.bf16.mxu0 %v4412_v24 }
  0x5d   :  { %1182 = vmatpush1.bf16.msra.mxu1 %v4485_v46 }
  0x5e   :  { %1183 = vmatprep.subr.bf16.mxu1 %v4490_v47 }
  0x5f   :  { %761 = vmatpush1.bf16.msra.mxu0 %v4410_v28 }
  0x60   :  { %762 = vmatprep.subr.bf16.mxu0 %v4418_v29 }
  0x61   :  { %1184 = vmatpush1.bf16.msra.mxu1 %v4488_v50 }
  0x62   :  { %1185 = vmatprep.subr.bf16.mxu1 %v4493_v51 }
  0x63   :  { %763 = vmatpush1.bf16.msra.mxu0 %v4416_v32 }
  0x64   :  { %764 = vmatprep.subr.bf16.mxu0 %v4424_v33 }
  0x65   :  { %1186 = vmatpush1.bf16.msra.mxu1 %v4491_v54 }
  0x66   :  { %1187 = vmatprep.subr.bf16.mxu1 %v4496_v55 }
  0x67   :  { %765 = vmatpush1.bf16.msra.mxu0 %v4422_v36 }
  0x68   :  { %766 = vmatprep.subr.bf16.mxu0 %v4430_v37 }
  0x69   :  { %1188 = vmatpush1.bf16.msra.mxu1 %v4494_v58 }
  0x6a   :  { %1189 = vmatprep.subr.bf16.mxu1 %v4499_v59 }
  0x6b   :  { %767 = vmatpush1.bf16.msra.mxu0 %v4428_v40 }
  0x6c   :  { %768 = vmatprep.subr.bf16.mxu0 %v4436_v41 }
  0x6d   :  { %1190 = vmatpush1.bf16.msra.mxu1 %v4497_v63 }
  0x6e   :  { %1191 = vmatprep.subr.bf16.mxu1 %v4502_v6 }
  0x6f   :  { %769 = vmatpush1.bf16.msra.mxu0 %v4434_v44 }
  0x70   :  { %770 = vmatprep.subr.bf16.mxu0 %v4442_v45 }
  0x71   :  { %1192 = vmatpush1.bf16.msra.mxu1 %v4500_v5 }
  0x73   :  { %771 = vmatpush1.bf16.msra.mxu0 %v4440_v48 }
  0x74   :  { %772 = vmatprep.subr.bf16.mxu0 %v4448_v49 }
  0x77   :  { %773 = vmatpush1.bf16.msra.mxu0 %v4446_v52 }
  0x78   :  { %774 = vmatprep.subr.bf16.mxu0 %v4454_v53 }
  0x7b   :  { %775 = vmatpush1.bf16.msra.mxu0 %v4452_v56 }
  0x7c   :  { %776 = vmatprep.subr.bf16.mxu0 %v4460_v57 }
  0x7f   :  { %777 = vmatpush1.bf16.msra.mxu0 %v4458_v60 }
  0x80   :  { %787 = vmatprep.subr.bf16.mxu0 %v4466_v62 }
  0x82   :  { %779 = vmatmul.mubr.bf16.vlgmr.msra.gmra.mrb[0].mxu0 %v57_v1 }
  0x83   :  { %788 = vmatpush1.bf16.msra.mxu0 %v4464_v0  ;;  %819 = vmatprep.mubr.bf16.mxu0 %v4987_v2 }
  0x8e   :  { %3878 = vmatmul.mubr.msk.bf16.vlgmr.msra.gmra.mrb[0].mxu0 %vm660_vm0, %v59_v4 }
  0x8f   :  { %18 = vsyncpa [#allocation3], 0  ;;  %v4505_v7 = vld [vmem:[%s6542_s3 + $0x164] ss:$16 sps:$4 sm:$0xff]   ;;  %v4503_v8 = vld [vmem:[%s6542_s3 + $0x160] ss:$16 sps:$4 sm:$0xff]   ;;  %v160_v43 = vlaneseq }
  0x90   :  { %1193 = vmatprep.subr.bf16.mxu1 %v4505_v7  ;;  %v880_v9 = vld [vmem:[%s6542_s3 + $0x180] sm:$0x33]  ;;  %vm1158_vm1 = vcmask 1041408   ;;  %v4510_v13 = vld [vmem:[%s6542_s3 + $0xc] ss:$16 sps:$4 sm:$0xff]   ;;  %vm1154_vm2 = vcmask 556032  }
  0x91   :  { %1194 = vmatpush1.bf16.msra.mxu1 %v4503_v8  ;;  %v3928_v10 = vcombine.high %v880_v9, %v880_v9  ;;  %v3927_v11 = vcombine.low %v880_v9, %v880_v9  ;;  %v4549_v14 = vld [vmem:[%s6544_s5 + $0x8] ss:$28 sps:$4 sm:$0xff]   ;;  %v4555_v17 = vld [vmem:[%s6544_s5 + $0x40] ss:$28 sps:$4 sm:$0xff]   ;;  %v4561_v19 = vld [vmem:[%s6544_s5 + $0x78] ss:$28 sps:$4 sm:$0xff]  }
  0x92   :  { %v4551_v15 = vld [vmem:[%s6544_s5 + $0xc] ss:$28 sps:$4 sm:$0xff]   ;;  %v4557_v16 = vld [vmem:[%s6544_s5 + $0x44] ss:$28 sps:$4 sm:$0xff]   ;;  %v4563_v18 = vld [vmem:[%s6544_s5 + $0x7c] ss:$28 sps:$4 sm:$0xff]  }
  0x93   :  { %3931 = vmatprep.subr.msk.bf16.mxu1 %vm1158_vm1, %v3928_v10  ;;  %v1160_v12 = vsel %vm1158_vm1, %v3927_v11, 0  ;;  %2483 = vmatprep.subr.bf16.mxu0 %v4551_v15  ;;  %v4569_v20 = vld [vmem:[%s6544_s5 + $0xb4] ss:$28 sps:$4 sm:$0xff]   ;;  %v4575_v22 = vld [vmem:[%s6544_s5 + $0xec] ss:$28 sps:$4 sm:$0xff]   ;;  %v5539_v46 = vshrl.u32 %v160_v43, 7 }
  0x94   :  { %2484 = vmatpush1.bf16.msra.mxu0 %v4549_v14  ;;  %v4567_v21 = vld [vmem:[%s6544_s5 + $0xb0] ss:$28 sps:$4 sm:$0xff]   ;;  %v4573_v24 = vld [vmem:[%s6544_s5 + $0xe8] ss:$28 sps:$4 sm:$0xff]   ;;  %v4579_v29 = vld [vmem:[%s6544_s5 + $0x120] ss:$28 sps:$4 sm:$0xff]  }
  0x95   :  { %1196 = vmatpush1.bf16.msra.mxu1 %v1160_v12  ;;  %2485 = vmatprep.subr.bf16.mxu0 %v4557_v16  ;;  %v4581_v27 = vld [vmem:[%s6544_s5 + $0x124] ss:$28 sps:$4 sm:$0xff]   ;;  %v4587_v30 = vld [vmem:[%s6544_s5 + $0x15c] ss:$28 sps:$4 sm:$0xff]   ;;  %v4593_v32 = vld [vmem:[%s6544_s5 + $0x194] ss:$28 sps:$4 sm:$0xff]  }
  0x96   :  { %1212 = vmatprep.subr.bf16.mxu1 %v4510_v13  ;;  %v4585_v31 = vld [vmem:[%s6544_s5 + $0x158] ss:$28 sps:$4 sm:$0xff]   ;;  %v4591_v33 = vld [vmem:[%s6544_s5 + $0x190] ss:$28 sps:$4 sm:$0xff]   ;;  %v4597_v35 = vld [vmem:[%s6544_s5 + $0x1c8] ss:$28 sps:$4 sm:$0xff]  }
  0x97   :  { %v4599_v34 = vld [vmem:[%s6544_s5 + $0x1cc] ss:$28 sps:$4 sm:$0xff]   ;;  %v4605_v36 = vld [vmem:[%s6544_s5 + $0x204] ss:$28 sps:$4 sm:$0xff]   ;;  %v4611_v38 = vld [vmem:[%s6544_s5 + $0x23c] ss:$28 sps:$4 sm:$0xff]  }
  0x98   :  { %2486 = vmatpush1.bf16.msra.mxu0 %v4555_v17  ;;  %v4603_v37 = vld [vmem:[%s6544_s5 + $0x200] ss:$28 sps:$4 sm:$0xff]   ;;  %v4609_v39 = vld [vmem:[%s6544_s5 + $0x238] ss:$28 sps:$4 sm:$0xff]   ;;  %v4615_v41 = vld [vmem:[%s6544_s5 + $0x270] ss:$28 sps:$4 sm:$0xff]  }
  0x99   :  { %2487 = vmatprep.subr.bf16.mxu0 %v4563_v18  ;;  %v4617_v40 = vld [vmem:[%s6544_s5 + $0x274] ss:$28 sps:$4 sm:$0xff]   ;;  %v4623_v42 = vld [vmem:[%s6544_s5 + $0x2ac] ss:$28 sps:$4 sm:$0xff]   ;;  %v4629_v45 = vld [vmem:[%s6544_s5 + $0x2e4] ss:$28 sps:$4 sm:$0xff]  }
  0x9a   :  { %v4621_v44 = vld [vmem:[%s6544_s5 + $0x2a8] ss:$28 sps:$4 sm:$0xff]   ;;  %v4627_v47 = vld [vmem:[%s6544_s5 + $0x2e0] ss:$28 sps:$4 sm:$0xff]   ;;  %v5545_v48 = vsub.s32 0, %v5539_v46  ;;  %v5551_v50 = vsub.s32 1, %v5539_v46 }
  0x9b   :  { %v158_v49 = vld [vmem:[%s6541_s2] sm:$0x3]  ;;  %v4508_v0 = vld [vmem:[%s6542_s3 + $0x8] ss:$16 sps:$4 sm:$0xff]   ;;  %v4513_v3 = vld [vmem:[%s6542_s3 + $0x2c] ss:$16 sps:$4 sm:$0xff]  }
  0x9c   :  { %2488 = vmatpush1.bf16.msra.mxu0 %v4561_v19  ;;  %v163_v51 = vrot.slane %v158_v49, %v5545_v48  ;;  %v167_v52 = vrot.slane %v158_v49, %v5551_v50  ;;  %v4511_v4 = vld [vmem:[%s6542_s3 + $0x28] ss:$16 sps:$4 sm:$0xff]   ;;  %v4516_v5 = vld [vmem:[%s6542_s3 + $0x4c] ss:$16 sps:$4 sm:$0xff]   ;;  %vm3353_vm3 = vcmask 261120   ;;  %vm3636_vm4 = vcmask 1043456  }
  0x9d   :  { %2489 = vmatprep.subr.bf16.mxu0 %v4569_v20  ;;  %v4514_v6 = vld [vmem:[%s6542_s3 + $0x48] ss:$16 sps:$4 sm:$0xff]   ;;  %v4519_v7 = vld [vmem:[%s6542_s3 + $0x6c] ss:$16 sps:$4 sm:$0xff]   ;;  %vm3632_vm5 = vcmask 588800   ;;  %vm3721_vm6 = vcmask 1040384  }
  0x9e   :  { %v4517_v8 = vld [vmem:[%s6542_s3 + $0x68] ss:$16 sps:$4 sm:$0xff]   ;;  %v4522_v9 = vld [vmem:[%s6542_s3 + $0x8c] ss:$16 sps:$4 sm:$0xff]   ;;  %vm4989_vm7 = vmmov 0   ;;  %vm3717_vm8 = vcmask 408576  }
  0x9f   :  { %v4520_v10 = vld [vmem:[%s6542_s3 + $0x88] ss:$16 sps:$4 sm:$0xff]   ;;  %v4525_v11 = vld [vmem:[%s6542_s3 + $0xac] ss:$16 sps:$4 sm:$0xff]   ;;  %s4990_s15 = smov [#allocation2]  }
  0xa0   :  { %2490 = vmatpush1.bf16.msra.mxu0 %v4567_v21  ;;  %v4523_v12 = vld [vmem:[%s6542_s3 + $0xa8] ss:$16 sps:$4 sm:$0xff]   ;;  %v4528_v13 = vld [vmem:[%s6542_s3 + $0xcc] ss:$16 sps:$4 sm:$0xff]   ;;  %s3772_s16 = sshll.u32 %s4990_s15, 4  ;;  %s3773_s16 = int_to_ptr.vmem [resolvable:$true] %s3772_s16 }
  0xa1   :  { %2491 = vmatprep.subr.bf16.mxu0 %v4575_v22  ;;  %v4526_v14 = vld [vmem:[%s6542_s3 + $0xc8] ss:$16 sps:$4 sm:$0xff]   ;;  %v4531_v15 = vld [vmem:[%s6542_s3 + $0xec] ss:$16 sps:$4 sm:$0xff]   ;;  %p4968_p1 = scmp.lt.s32.totalorder %s3773_s16, %s3773_s16 }
  0xa2   :  { %v4529_v16 = vld [vmem:[%s6542_s3 + $0xe8] ss:$16 sps:$4 sm:$0xff]   ;;  %v4534_v17 = vld [vmem:[%s6542_s3 + $0x10c] ss:$16 sps:$4 sm:$0xff]  }
  0xa3   :  { %v4532_v18 = vld [vmem:[%s6542_s3 + $0x108] ss:$16 sps:$4 sm:$0xff]   ;;  %v4537_v19 = vld [vmem:[%s6542_s3 + $0x12c] ss:$16 sps:$4 sm:$0xff]  }
  0xa4   :  { %2492 = vmatpush1.bf16.msra.mxu0 %v4573_v24  ;;  %v4535_v20 = vld [vmem:[%s6542_s3 + $0x128] ss:$16 sps:$4 sm:$0xff]   ;;  %v4540_v21 = vld [vmem:[%s6542_s3 + $0x14c] ss:$16 sps:$4 sm:$0xff]  }
  0xa5   :  { %2493 = vmatprep.subr.bf16.mxu0 %v4581_v27  ;;  %v4538_v22 = vld [vmem:[%s6542_s3 + $0x148] ss:$16 sps:$4 sm:$0xff]  }
  0xa6   :  { %v881_v24 = vld [vmem:[%s6542_s3 + $0x188] sm:$0x33]  ;;  %v4602_v49 = vld [vmem:[%s6544_s5 + $0x1fc] ss:$28 sps:$4 sm:$0xff]  }
  0xa7   :  { %v3929_v27 = vcombine.low %v881_v24, %v881_v24  ;;  %v4590_v43 = vld [vmem:[%s6544_s5 + $0x18c] ss:$28 sps:$4 sm:$0xff]  }
  0xa8   :  { %2494 = vmatpush1.bf16.msra.mxu0 %v4579_v29  ;;  %v4548_v29 = vld [vmem:[%s6544_s5 + $0x4] ss:$28 sps:$4 sm:$0xff]  }
  0xa9   :  { %2495 = vmatprep.subr.bf16.mxu0 %v4587_v30  ;;  %v4546_v30 = vld [vmem:[%s6544_s5] ss:$28 sps:$4 sm:$0xff]  }
  0xac   :  { %2496 = vmatpush1.bf16.msra.mxu0 %v4585_v31  ;;  %v4554_v31 = vld [vmem:[%s6544_s5 + $0x3c] ss:$28 sps:$4 sm:$0xff]  }
  0xad   :  { %2497 = vmatprep.subr.bf16.mxu0 %v4593_v32  ;;  %v4552_v32 = vld [vmem:[%s6544_s5 + $0x38] ss:$28 sps:$4 sm:$0xff]  }
  0xb0   :  { %2498 = vmatpush1.bf16.msra.mxu0 %v4591_v33  ;;  %v4560_v33 = vld [vmem:[%s6544_s5 + $0x74] ss:$28 sps:$4 sm:$0xff]  }
  0xb1   :  { %2499 = vmatprep.subr.bf16.mxu0 %v4599_v34  ;;  %v4558_v34 = vld [vmem:[%s6544_s5 + $0x70] ss:$28 sps:$4 sm:$0xff]  }
  0xb4   :  { %2500 = vmatpush1.bf16.msra.mxu0 %v4597_v35  ;;  %v4566_v35 = vld [vmem:[%s6544_s5 + $0xac] ss:$28 sps:$4 sm:$0xff]  }
  0xb5   :  { %2501 = vmatprep.subr.bf16.mxu0 %v4605_v36  ;;  %v4564_v36 = vld [vmem:[%s6544_s5 + $0xa8] ss:$28 sps:$4 sm:$0xff]  }
  0xb8   :  { %2502 = vmatpush1.bf16.msra.mxu0 %v4603_v37  ;;  %v4572_v37 = vld [vmem:[%s6544_s5 + $0xe4] ss:$28 sps:$4 sm:$0xff]  }
  0xb9   :  { %2503 = vmatprep.subr.bf16.mxu0 %v4611_v38  ;;  %v4570_v38 = vld [vmem:[%s6544_s5 + $0xe0] ss:$28 sps:$4 sm:$0xff]  }
  0xbc   :  { %2504 = vmatpush1.bf16.msra.mxu0 %v4609_v39  ;;  %v4578_v39 = vld [vmem:[%s6544_s5 + $0x11c] ss:$28 sps:$4 sm:$0xff]  }
  0xbd   :  { %2505 = vmatprep.subr.bf16.mxu0 %v4617_v40  ;;  %v4576_v40 = vld [vmem:[%s6544_s5 + $0x118] ss:$28 sps:$4 sm:$0xff]  }
  0xc0   :  { %2506 = vmatpush1.bf16.msra.mxu0 %v4615_v41  ;;  %v4584_v41 = vld [vmem:[%s6544_s5 + $0x154] ss:$28 sps:$4 sm:$0xff]  }
  0xc1   :  { %2507 = vmatprep.subr.bf16.mxu0 %v4623_v42  ;;  %v4582_v42 = vld [vmem:[%s6544_s5 + $0x150] ss:$28 sps:$4 sm:$0xff]  }
  0xc4   :  { %2508 = vmatpush1.bf16.msra.mxu0 %v4621_v44  ;;  %v4588_v44 = vld [vmem:[%s6544_s5 + $0x188] ss:$28 sps:$4 sm:$0xff]  }
  0xc5   :  { %2509 = vmatprep.subr.bf16.mxu0 %v4629_v45  ;;  %v4596_v45 = vld [vmem:[%s6544_s5 + $0x1c4] ss:$28 sps:$4 sm:$0xff]  }
  0xc8   :  { %2510 = vmatpush1.bf16.msra.mxu0 %v4627_v47  ;;  %v4594_v47 = vld [vmem:[%s6544_s5 + $0x1c0] ss:$28 sps:$4 sm:$0xff]  }
 0x11b   :  { %v698_v23 = vpop.f32.mrb[0].mxu1 }
 0x11c   :  { %v700_v25 = vpop.f32.mrb[1].mxu1  ;;  %v699_v53 = vadd.f32 %v698_v23, %v163_v51  ;;  %v4543_v23 = vld [vmem:[%s6542_s3 + $0x16c] ss:$16 sps:$4 sm:$0xff]  }
 0x11d   :  { %v702_v26 = vpop.f32.mrb[2].mxu1  ;;  %v701_v54 = vadd.f32 %v700_v25, %v167_v52  ;;  %v4541_v25 = vld [vmem:[%s6542_s3 + $0x168] ss:$16 sps:$4 sm:$0xff]  }
 0x11e   :  { %v703_v28 = vpop.f32.mrb[3].mxu1  ;;  %v3930_v26 = vcombine.high %v881_v24, %v881_v24  ;;  %v4635_v51 = vld [vmem:[%s6544_s5 + $0x31c] ss:$28 sps:$4 sm:$0xff]  }
 0x11f   :  { %v1166_v28 = vsel %vm1158_vm1, %v3929_v27, 0  ;;  %v4633_v52 = vld [vmem:[%s6544_s5 + $0x318] ss:$28 sps:$4 sm:$0xff]   ;;  %2511 = vmatprep.subr.bf16.mxu0 %v4635_v51  ;;  %v4684_v51 = vld [vmem:[%s6544_s5 + $0x508] ss:$28 sps:$4 sm:$0xff]  }
 0x120   :  { %2512 = vmatpush1.bf16.msra.mxu0 %v4633_v52  ;;  %v4648_v24 = vld [vmem:[%s6544_s5 + $0x3b8] ss:$28 sps:$4 sm:$0xff]   ;;  %v4687_v52 = vld [vmem:[%s6544_s5 + $0x510] ss:$28 sps:$4 sm:$0xff]  }
 0x121   :  { %v4659_v27 = vld [vmem:[%s6544_s5 + $0x3fc] ss:$28 sps:$4 sm:$0xff]  }
 0x161   :  { %v821_v55 = vpop.f32.mrb[0].mxu0 }
 0x162   :  { %v4276_v56 = vadd.f32 %v821_v55, %v699_v53  ;;  %v823_v57 = vpop.f32.mrb[1].mxu0  ;;  %v4600_v53 = vld [vmem:[%s6544_s5 + $0x1f8] ss:$28 sps:$4 sm:$0xff]  }
 0x163   :  { %v4278_v58 = vadd.f32 %v823_v57, %v701_v54  ;;  %v825_v59 = vpop.f32.mrb[2].mxu0  ;;  %v4608_v54 = vld [vmem:[%s6544_s5 + $0x234] ss:$28 sps:$4 sm:$0xff]  }
 0x164   :  { %v828_v60 = vmax.f32 %v4276_v56, 0.0  ;;  %v826_v61 = vpop.f32.mrb[3].mxu0  ;;  %v4641_v55 = vld [vmem:[%s6544_s5 + $0x354] ss:$28 sps:$4 sm:$0xff]   ;;  %v4612_v59 = vld [vmem:[%s6544_s5 + $0x268] ss:$28 sps:$4 sm:$0xff]  }
 0x165   :  { %v829_v62 = vmax.f32 %v4278_v58, 0.0  ;;  %v4639_v56 = vld [vmem:[%s6544_s5 + $0x350] ss:$28 sps:$4 sm:$0xff]   ;;  %2513 = vmatprep.subr.bf16.mxu0 %v4641_v55  ;;  %v4620_v61 = vld [vmem:[%s6544_s5 + $0x2a4] ss:$28 sps:$4 sm:$0xff]  }
 0x166   :  { %v830_v1 = vpack.c.bf16 %v828_v60, %v828_v60  ;;  %v4606_v57 = vld [vmem:[%s6544_s5 + $0x230] ss:$28 sps:$4 sm:$0xff]   ;;  %2514 = vmatpush1.bf16.msra.mxu0 %v4639_v56  ;;  %v4690_v55 = vld [vmem:[%s6544_s5 + $0x540] ss:$28 sps:$4 sm:$0xff]   ;;  %v4693_v56 = vld [vmem:[%s6544_s5 + $0x548] ss:$28 sps:$4 sm:$0xff]  }
 0x167   :  { %v831_v63 = vpack.c.bf16 %v829_v62, %v829_v62  ;;  %v4614_v58 = vld [vmem:[%s6544_s5 + $0x26c] ss:$28 sps:$4 sm:$0xff]   ;;  %v4618_v62 = vld [vmem:[%s6544_s5 + $0x2a0] ss:$28 sps:$4 sm:$0xff]  }
 0x168   :  { %v4647_v60 = vld [vmem:[%s6544_s5 + $0x38c] ss:$28 sps:$4 sm:$0xff]  }
 0x169   :  { %3932 = vmatprep.mubr.msk.bf16.mxu1 %vm1154_vm2, %v831_v63  ;;  %2524 = vmatprep.subr.bf16.mxu0 %v4647_v60  ;;  %v898_v60 = vsub.s32 3, %v5539_v46 }
 0x16a   :  { %1204 = vmatmul.mubr.bf16.vlgmr.msra.gmra.mrb[4].mxu1 %v830_v1 }
 0x16b   :  { %1213 = vmatpush1.bf16.msra.mxu1 %v4508_v0  ;;  %3934 = vmatprep.mubr.msk.bf16.mxu1 %vm1154_vm2, %v831_v63  ;;  %v4626_v63 = vld [vmem:[%s6544_s5 + $0x2dc] ss:$28 sps:$4 sm:$0xff]  }
 0x16c   :  { %1214 = vmatprep.subr.bf16.mxu1 %v4513_v3  ;;  %v4624_v0 = vld [vmem:[%s6544_s5 + $0x2d8] ss:$28 sps:$4 sm:$0xff]   ;;  %v4630_v3 = vld [vmem:[%s6544_s5 + $0x310] ss:$28 sps:$4 sm:$0xff]  }
 0x16f   :  { %1215 = vmatpush1.bf16.msra.mxu1 %v4511_v4  ;;  %v4638_v4 = vld [vmem:[%s6544_s5 + $0x34c] ss:$28 sps:$4 sm:$0xff]  }
 0x170   :  { %1216 = vmatprep.subr.bf16.mxu1 %v4516_v5  ;;  %v4636_v5 = vld [vmem:[%s6544_s5 + $0x348] ss:$28 sps:$4 sm:$0xff]  }
 0x173   :  { %1217 = vmatpush1.bf16.msra.mxu1 %v4514_v6  ;;  %v4644_v6 = vld [vmem:[%s6544_s5 + $0x384] ss:$28 sps:$4 sm:$0xff]  }
 0x174   :  { %1218 = vmatprep.subr.bf16.mxu1 %v4519_v7  ;;  %v5746_v7 = vld [vmem:[%s6543_s4] sm:$0xf] }
 0x177   :  { %1219 = vmatpush1.bf16.msra.mxu1 %v4517_v8  ;;  %v887_v8 = vrot.slane %v5746_v7, %v5545_v48 }
 0x178   :  { %1220 = vmatprep.subr.bf16.mxu1 %v4522_v9  ;;  %v891_v9 = vrot.slane %v5746_v7, %v5551_v50 }
 0x17b   :  { %1221 = vmatpush1.bf16.msra.mxu1 %v4520_v10 }
 0x17c   :  { %1222 = vmatprep.subr.bf16.mxu1 %v4525_v11 }
 0x17f   :  { %1223 = vmatpush1.bf16.msra.mxu1 %v4523_v12 }
 0x180   :  { %1224 = vmatprep.subr.bf16.mxu1 %v4528_v13 }
 0x183   :  { %1225 = vmatpush1.bf16.msra.mxu1 %v4526_v14 }
 0x184   :  { %1226 = vmatprep.subr.bf16.mxu1 %v4531_v15 }
 0x187   :  { %1227 = vmatpush1.bf16.msra.mxu1 %v4529_v16 }
 0x188   :  { %1228 = vmatprep.subr.bf16.mxu1 %v4534_v17 }
 0x18b   :  { %1229 = vmatpush1.bf16.msra.mxu1 %v4532_v18 }
 0x18c   :  { %1230 = vmatprep.subr.bf16.mxu1 %v4537_v19  ;;  %v4642_v19 = vld [vmem:[%s6544_s5 + $0x380] ss:$28 sps:$4 sm:$0xff]  }
 0x18f   :  { %1231 = vmatpush1.bf16.msra.mxu1 %v4535_v20  ;;  %v4645_v20 = vld [vmem:[%s6544_s5 + $0x388] ss:$28 sps:$4 sm:$0xff]  }
 0x190   :  { %1232 = vmatprep.subr.bf16.mxu1 %v4540_v21 }
 0x193   :  { %1233 = vmatpush1.bf16.msra.mxu1 %v4538_v22  ;;  %v4650_v22 = vld [vmem:[%s6544_s5 + $0x3bc] ss:$28 sps:$4 sm:$0xff]  }
 0x194   :  { %1234 = vmatprep.subr.bf16.mxu1 %v4543_v23  ;;  %v4653_v23 = vld [vmem:[%s6544_s5 + $0x3c4] ss:$28 sps:$4 sm:$0xff]  }
 0x197   :  { %1235 = vmatpush1.bf16.msra.mxu1 %v4541_v25  ;;  %v4651_v25 = vld [vmem:[%s6544_s5 + $0x3c0] ss:$28 sps:$4 sm:$0xff]  }
 0x198   :  { %3933 = vmatprep.subr.msk.bf16.mxu1 %vm1158_vm1, %v3930_v26  ;;  %v4656_v26 = vld [vmem:[%s6544_s5 + $0x3f4] ss:$28 sps:$4 sm:$0xff]  }
 0x19b   :  { %1237 = vmatpush1.bf16.msra.mxu1 %v1166_v28  ;;  %v4654_v28 = vld [vmem:[%s6544_s5 + $0x3f0] ss:$28 sps:$4 sm:$0xff]  }
 0x19c   :  { %2401 = vmatprep.subr.bf16.mxu1 %v4548_v29  ;;  %v4657_v29 = vld [vmem:[%s6544_s5 + $0x3f8] ss:$28 sps:$4 sm:$0xff]  }
 0x19e   :  { %1245 = vmatmul.mubr.bf16.vlgmr.msra.gmra.mrb[8].mxu1 %v830_v1  ;;  %v4632_v1 = vld [vmem:[%s6544_s5 + $0x314] ss:$28 sps:$4 sm:$0xff]  }
 0x19f   :  { %2402 = vmatpush1.bf16.msra.mxu1 %v4546_v30  ;;  %v4662_v30 = vld [vmem:[%s6544_s5 + $0x42c] ss:$28 sps:$4 sm:$0xff]  }
 0x1a0   :  { %2403 = vmatprep.subr.bf16.mxu1 %v4554_v31  ;;  %v4665_v31 = vld [vmem:[%s6544_s5 + $0x434] ss:$28 sps:$4 sm:$0xff]  }
 0x1a3   :  { %2404 = vmatpush1.bf16.msra.mxu1 %v4552_v32  ;;  %v4660_v32 = vld [vmem:[%s6544_s5 + $0x428] ss:$28 sps:$4 sm:$0xff]  }
 0x1a4   :  { %2405 = vmatprep.subr.bf16.mxu1 %v4560_v33  ;;  %v4663_v33 = vld [vmem:[%s6544_s5 + $0x430] ss:$28 sps:$4 sm:$0xff]  }
 0x1a7   :  { %2406 = vmatpush1.bf16.msra.mxu1 %v4558_v34  ;;  %v4668_v34 = vld [vmem:[%s6544_s5 + $0x464] ss:$28 sps:$4 sm:$0xff]  }
 0x1a8   :  { %2407 = vmatprep.subr.bf16.mxu1 %v4566_v35  ;;  %v4671_v35 = vld [vmem:[%s6544_s5 + $0x46c] ss:$28 sps:$4 sm:$0xff]  }
 0x1ab   :  { %2408 = vmatpush1.bf16.msra.mxu1 %v4564_v36  ;;  %v4666_v36 = vld [vmem:[%s6544_s5 + $0x460] ss:$28 sps:$4 sm:$0xff]  }
 0x1ac   :  { %2409 = vmatprep.subr.bf16.mxu1 %v4572_v37  ;;  %v4669_v37 = vld [vmem:[%s6544_s5 + $0x468] ss:$28 sps:$4 sm:$0xff]  }
 0x1af   :  { %2410 = vmatpush1.bf16.msra.mxu1 %v4570_v38  ;;  %v4674_v38 = vld [vmem:[%s6544_s5 + $0x49c] ss:$28 sps:$4 sm:$0xff]  }
 0x1b0   :  { %2411 = vmatprep.subr.bf16.mxu1 %v4578_v39  ;;  %v4677_v39 = vld [vmem:[%s6544_s5 + $0x4a4] ss:$28 sps:$4 sm:$0xff]  }
 0x1b3   :  { %2412 = vmatpush1.bf16.msra.mxu1 %v4576_v40  ;;  %v4672_v40 = vld [vmem:[%s6544_s5 + $0x498] ss:$28 sps:$4 sm:$0xff]  }
 0x1b4   :  { %2413 = vmatprep.subr.bf16.mxu1 %v4584_v41  ;;  %v4675_v41 = vld [vmem:[%s6544_s5 + $0x4a0] ss:$28 sps:$4 sm:$0xff]  }
 0x1b7   :  { %2414 = vmatpush1.bf16.msra.mxu1 %v4582_v42  ;;  %v4680_v42 = vld [vmem:[%s6544_s5 + $0x4d4] ss:$28 sps:$4 sm:$0xff]  }
 0x1b8   :  { %2415 = vmatprep.subr.bf16.mxu1 %v4590_v43  ;;  %v4683_v43 = vld [vmem:[%s6544_s5 + $0x4dc] ss:$28 sps:$4 sm:$0xff]  }
 0x1bb   :  { %2416 = vmatpush1.bf16.msra.mxu1 %v4588_v44  ;;  %v4678_v44 = vld [vmem:[%s6544_s5 + $0x4d0] ss:$28 sps:$4 sm:$0xff]  }
 0x1bc   :  { %2417 = vmatprep.subr.bf16.mxu1 %v4596_v45  ;;  %v4681_v45 = vld [vmem:[%s6544_s5 + $0x4d8] ss:$28 sps:$4 sm:$0xff]  }
 0x1bf   :  { %2418 = vmatpush1.bf16.msra.mxu1 %v4594_v47  ;;  %v4686_v47 = vld [vmem:[%s6544_s5 + $0x50c] ss:$28 sps:$4 sm:$0xff]  }
 0x1c0   :  { %2419 = vmatprep.subr.bf16.mxu1 %v4602_v49  ;;  %v4689_v49 = vld [vmem:[%s6544_s5 + $0x514] ss:$28 sps:$4 sm:$0xff]  }
 0x1c3   :  { %2420 = vmatpush1.bf16.msra.mxu1 %v4600_v53  ;;  %v4692_v53 = vld [vmem:[%s6544_s5 + $0x544] ss:$28 sps:$4 sm:$0xff]  }
 0x1c4   :  { %2421 = vmatprep.subr.bf16.mxu1 %v4608_v54  ;;  %v4695_v54 = vld [vmem:[%s6544_s5 + $0x54c] ss:$28 sps:$4 sm:$0xff]  }
 0x1c7   :  { %2422 = vmatpush1.bf16.msra.mxu1 %v4606_v57  ;;  %v4698_v57 = vld [vmem:[%s6544_s5 + $0x14] ss:$28 sps:$4 sm:$0xff]  }
 0x1c8   :  { %2423 = vmatprep.subr.bf16.mxu1 %v4614_v58  ;;  %v4699_v58 = vld [vmem:[%s6544_s5 + $0x1d8] ss:$28 sps:$4 sm:$0xff]  }
 0x1cb   :  { %2424 = vmatpush1.bf16.msra.mxu1 %v4612_v59  ;;  %v894_v59 = vsub.s32 2, %v5539_v46 }
 0x1cc   :  { %2425 = vmatprep.subr.bf16.mxu1 %v4620_v61 }
 0x1cd   :  { %v895_v61 = vrot.slane %v5746_v7, %v894_v59 }
 0x1cf   :  { %2426 = vmatpush1.bf16.msra.mxu1 %v4618_v62  ;;  %v899_v62 = vrot.slane %v5746_v7, %v898_v60  ;;  %v4703_v7 = vld [vmem:[%s6544_s5 + $0x4c] ss:$28 sps:$4 sm:$0xff]  }
 0x1d0   :  { %2427 = vmatprep.subr.bf16.mxu1 %v4626_v63 }
 0x1d3   :  { %2428 = vmatpush1.bf16.msra.mxu1 %v4624_v0 }
 0x1d4   :  { %2429 = vmatprep.subr.bf16.mxu1 %v4632_v1 }
 0x1d7   :  { %2430 = vmatpush1.bf16.msra.mxu1 %v4630_v3 }
 0x1d8   :  { %2431 = vmatprep.subr.bf16.mxu1 %v4638_v4 }
 0x1db   :  { %2432 = vmatpush1.bf16.msra.mxu1 %v4636_v5 }
 0x1dc   :  { %2442 = vmatprep.subr.bf16.mxu1 %v4644_v6 }
 0x23d   :  { %v1205_v10 = vpop.f32.mrb[4].mxu1 }
 0x23e   :  { %v1206_v11 = vadd.f32 %v1205_v10, %v887_v8  ;;  %v1207_v12 = vpop.f32.mrb[5].mxu1  ;;  %v4696_v10 = vld [vmem:[%s6544_s5 + $0x10] ss:$28 sps:$4 sm:$0xff]  }
 0x23f   :  { %v1208_v13 = vadd.f32 %v1207_v12, %v891_v9  ;;  %v1209_v14 = vpop.f32.mrb[6].mxu1 }
 0x240   :  { %v1253_v15 = vmax.f32 %v1206_v11, 0.0  ;;  %v1210_v16 = vpop.f32.mrb[7].mxu1  ;;  %v4700_v11 = vld [vmem:[%s6544_s5 + $0x18] ss:$28 sps:$4 sm:$0xff]   ;;  %v4701_v14 = vld [vmem:[%s6544_s5 + $0x48] ss:$28 sps:$4 sm:$0xff]  }
 0x241   :  { %v1254_v17 = vmax.f32 %v1208_v13, 0.0  ;;  %v4704_v13 = vld [vmem:[%s6544_s5 + $0x210] ss:$28 sps:$4 sm:$0xff]   ;;  %v4708_v16 = vld [vmem:[%s6544_s5 + $0x84] ss:$28 sps:$4 sm:$0xff]  }
 0x242   :  { %v5760_v21 = vpack.c.bf16 %v1253_v15, %v1253_v15  ;;  %v4705_v15 = vld [vmem:[%s6544_s5 + $0x50] ss:$28 sps:$4 sm:$0xff]  }
 0x243   :  { %v5752_v18 = vpack.c.bf16 %v1254_v17, %v1254_v17  ;;  %v4709_v17 = vld [vmem:[%s6544_s5 + $0x248] ss:$28 sps:$4 sm:$0xff]  }
 0x245   :  { %2433 = vmatprep.mubr.bf16.mxu1 %v5752_v18  ;;  %2515 = vmatprep.mubr.bf16.mxu0 %v5752_v18 }
 0x246   :  { %2434 = vmatmul.mubr.bf16.vlgmr.msra.gmra.mrb[12].mxu1 %v5760_v21  ;;  %2516 = vmatmul.mubr.bf16.vlgmr.msra.gmra.mrb[4].mxu0 %v5760_v21 }
 0x247   :  { %2443 = vmatpush1.bf16.msra.mxu1 %v4642_v19  ;;  %2525 = vmatpush1.bf16.msra.mxu0 %v4645_v20  ;;  %v4706_v19 = vld [vmem:[%s6544_s5 + $0x80] ss:$28 sps:$4 sm:$0xff]  }
 0x248   :  { %2444 = vmatprep.subr.bf16.mxu1 %v4650_v22  ;;  %2526 = vmatprep.subr.bf16.mxu0 %v4653_v23  ;;  %v4713_v20 = vld [vmem:[%s6544_s5 + $0xbc] ss:$28 sps:$4 sm:$0xff]  }
 0x249   :  { %v4714_v22 = vld [vmem:[%s6544_s5 + $0x280] ss:$28 sps:$4 sm:$0xff]   ;;  %v4711_v23 = vld [vmem:[%s6544_s5 + $0xb8] ss:$28 sps:$4 sm:$0xff]  }
 0x24b   :  { %2445 = vmatpush1.bf16.msra.mxu1 %v4648_v24  ;;  %2527 = vmatpush1.bf16.msra.mxu0 %v4651_v25  ;;  %v4715_v24 = vld [vmem:[%s6544_s5 + $0xc0] ss:$28 sps:$4 sm:$0xff]   ;;  %v4718_v25 = vld [vmem:[%s6544_s5 + $0xf4] ss:$28 sps:$4 sm:$0xff]  }
 0x24c   :  { %2446 = vmatprep.subr.bf16.mxu1 %v4656_v26  ;;  %2528 = vmatprep.subr.bf16.mxu0 %v4659_v27  ;;  %v4719_v26 = vld [vmem:[%s6544_s5 + $0x2b8] ss:$28 sps:$4 sm:$0xff]   ;;  %v4716_v27 = vld [vmem:[%s6544_s5 + $0xf0] ss:$28 sps:$4 sm:$0xff]  }
 0x24f   :  { %2447 = vmatpush1.bf16.msra.mxu1 %v4654_v28  ;;  %2529 = vmatpush1.bf16.msra.mxu0 %v4657_v29  ;;  %v4720_v28 = vld [vmem:[%s6544_s5 + $0xf8] ss:$28 sps:$4 sm:$0xff]   ;;  %v4723_v29 = vld [vmem:[%s6544_s5 + $0x12c] ss:$28 sps:$4 sm:$0xff]  }
 0x250   :  { %2448 = vmatprep.subr.bf16.mxu1 %v4662_v30  ;;  %2530 = vmatprep.subr.bf16.mxu0 %v4665_v31  ;;  %v4724_v30 = vld [vmem:[%s6544_s5 + $0x2f0] ss:$28 sps:$4 sm:$0xff]   ;;  %v4721_v31 = vld [vmem:[%s6544_s5 + $0x128] ss:$28 sps:$4 sm:$0xff]  }
 0x253   :  { %2449 = vmatpush1.bf16.msra.mxu1 %v4660_v32  ;;  %2531 = vmatpush1.bf16.msra.mxu0 %v4663_v33  ;;  %v4725_v32 = vld [vmem:[%s6544_s5 + $0x130] ss:$28 sps:$4 sm:$0xff]   ;;  %v4728_v33 = vld [vmem:[%s6544_s5 + $0x164] ss:$28 sps:$4 sm:$0xff]  }
 0x254   :  { %2450 = vmatprep.subr.bf16.mxu1 %v4668_v34  ;;  %2532 = vmatprep.subr.bf16.mxu0 %v4671_v35  ;;  %v4729_v34 = vld [vmem:[%s6544_s5 + $0x328] ss:$28 sps:$4 sm:$0xff]   ;;  %v4726_v35 = vld [vmem:[%s6544_s5 + $0x160] ss:$28 sps:$4 sm:$0xff]  }
 0x257   :  { %2451 = vmatpush1.bf16.msra.mxu1 %v4666_v36  ;;  %2533 = vmatpush1.bf16.msra.mxu0 %v4669_v37  ;;  %v4730_v36 = vld [vmem:[%s6544_s5 + $0x168] ss:$28 sps:$4 sm:$0xff]   ;;  %v4733_v37 = vld [vmem:[%s6544_s5 + $0x19c] ss:$28 sps:$4 sm:$0xff]  }
 0x258   :  { %2452 = vmatprep.subr.bf16.mxu1 %v4674_v38  ;;  %2534 = vmatprep.subr.bf16.mxu0 %v4677_v39  ;;  %v4734_v38 = vld [vmem:[%s6544_s5 + $0x360] ss:$28 sps:$4 sm:$0xff]   ;;  %v4731_v39 = vld [vmem:[%s6544_s5 + $0x198] ss:$28 sps:$4 sm:$0xff]  }
 0x25b   :  { %2453 = vmatpush1.bf16.msra.mxu1 %v4672_v40  ;;  %2535 = vmatpush1.bf16.msra.mxu0 %v4675_v41  ;;  %v4735_v40 = vld [vmem:[%s6544_s5 + $0x1a0] ss:$28 sps:$4 sm:$0xff]   ;;  %v4738_v41 = vld [vmem:[%s6544_s5 + $0x1d4] ss:$28 sps:$4 sm:$0xff]  }
 0x25c   :  { %2454 = vmatprep.subr.bf16.mxu1 %v4680_v42  ;;  %2536 = vmatprep.subr.bf16.mxu0 %v4683_v43  ;;  %v4798_v42 = vld [vmem:[%s6546_s7 + $0x4] ss:$8 sps:$4 sm:$0xff]  }
 0x25d   :  { %v4736_v43 = vld [vmem:[%s6544_s5 + $0x1d0] ss:$28 sps:$4 sm:$0xff]  }
 0x25f   :  { %2455 = vmatpush1.bf16.msra.mxu1 %v4678_v44  ;;  %2537 = vmatpush1.bf16.msra.mxu0 %v4681_v45  ;;  %v4796_v44 = vld [vmem:[%s6546_s7] ss:$8 sps:$4 sm:$0xff]  }
 0x260   :  { %2456 = vmatprep.subr.bf16.mxu1 %v4686_v47  ;;  %2538 = vmatprep.subr.bf16.mxu0 %v4689_v49  ;;  %v4741_v45 = vld [vmem:[%s6544_s5 + $0x20c] ss:$28 sps:$4 sm:$0xff]   ;;  %v4801_v47 = vld [vmem:[%s6546_s7 + $0x14] ss:$8 sps:$4 sm:$0xff]  }
 0x261   :  { %v4739_v49 = vld [vmem:[%s6544_s5 + $0x208] ss:$28 sps:$4 sm:$0xff]  }
 0x263   :  { %2457 = vmatpush1.bf16.msra.mxu1 %v4684_v51  ;;  %2539 = vmatpush1.bf16.msra.mxu0 %v4687_v52  ;;  %v4799_v51 = vld [vmem:[%s6546_s7 + $0x10] ss:$8 sps:$4 sm:$0xff]   ;;  %v4744_v52 = vld [vmem:[%s6544_s5 + $0x244] ss:$28 sps:$4 sm:$0xff]  }
 0x264   :  { %2458 = vmatprep.subr.bf16.mxu1 %v4692_v53  ;;  %2540 = vmatprep.subr.bf16.mxu0 %v4695_v54  ;;  %v4804_v53 = vld [vmem:[%s6546_s7 + $0x24] ss:$8 sps:$4 sm:$0xff]   ;;  %v4742_v54 = vld [vmem:[%s6544_s5 + $0x240] ss:$28 sps:$4 sm:$0xff]  }
 0x267   :  { %2459 = vmatpush1.bf16.msra.mxu1 %v4690_v55  ;;  %2541 = vmatpush1.bf16.msra.mxu0 %v4693_v56  ;;  %v4802_v55 = vld [vmem:[%s6546_s7 + $0x20] ss:$8 sps:$4 sm:$0xff]   ;;  %v4747_v56 = vld [vmem:[%s6544_s5 + $0x27c] ss:$28 sps:$4 sm:$0xff]  }
 0x268   :  { %2565 = vmatprep.subr.bf16.mxu1 %v4698_v57  ;;  %4236 = vmatprep.subr.bf16.mxu0 %v4699_v58  ;;  %v4807_v57 = vld [vmem:[%s6546_s7 + $0x34] ss:$8 sps:$4 sm:$0xff]  }
 0x269   :  { %v4745_v58 = vld [vmem:[%s6544_s5 + $0x278] ss:$28 sps:$4 sm:$0xff]  }
 0x271   :  { %v1246_v63 = vpop.f32.mrb[8].mxu1 }
 0x272   :  { %v1247_v0 = vadd.f32 %v1246_v63, %v895_v61  ;;  %v1248_v1 = vpop.f32.mrb[9].mxu1  ;;  %v4805_v61 = vld [vmem:[%s6546_s7 + $0x30] ss:$8 sps:$4 sm:$0xff]   ;;  %v4810_v63 = vld [vmem:[%s6546_s7 + $0x44] ss:$8 sps:$4 sm:$0xff]  }
 0x273   :  { %v1249_v3 = vadd.f32 %v1248_v1, %v899_v62  ;;  %v1250_v4 = vpop.f32.mrb[10].mxu1  ;;  %v4750_v62 = vld [vmem:[%s6544_s5 + $0x2b4] ss:$28 sps:$4 sm:$0xff]   ;;  %v4808_v1 = vld [vmem:[%s6546_s7 + $0x40] ss:$8 sps:$4 sm:$0xff]  }
 0x274   :  { %v1255_v5 = vmax.f32 %v1247_v0, 0.0  ;;  %v1251_v6 = vpop.f32.mrb[11].mxu1  ;;  %v4748_v0 = vld [vmem:[%s6544_s5 + $0x2b0] ss:$28 sps:$4 sm:$0xff]   ;;  %v4813_v4 = vld [vmem:[%s6546_s7 + $0x54] ss:$8 sps:$4 sm:$0xff]  }
 0x275   :  { %v1256_v8 = vmax.f32 %v1249_v3, 0.0  ;;  %v4753_v3 = vld [vmem:[%s6544_s5 + $0x2ec] ss:$28 sps:$4 sm:$0xff]   ;;  %v4811_v6 = vld [vmem:[%s6546_s7 + $0x50] ss:$8 sps:$4 sm:$0xff]  }
 0x276   :  { %v5884_v12 = vpack.c.bf16 %v1255_v5, %v1255_v5  ;;  %v4751_v5 = vld [vmem:[%s6544_s5 + $0x2e8] ss:$28 sps:$4 sm:$0xff]  }
 0x277   :  { %v5876_v9 = vpack.c.bf16 %v1256_v8, %v1256_v8  ;;  %v4756_v8 = vld [vmem:[%s6544_s5 + $0x324] ss:$28 sps:$4 sm:$0xff]  }
 0x279   :  { %4110 = vmatprep.mubr.msk.bf16.mxu1 %vm660_vm0, %v5876_v9  ;;  %4111 = vmatprep.mubr.msk.bf16.mxu0 %vm660_vm0, %v5876_v9 }
 0x27a   :  { %2475 = vmatmul.mubr.bf16.vlgmr.msra.gmra.mrb[12].mxu1 %v5884_v12  ;;  %2557 = vmatmul.mubr.bf16.vlgmr.msra.gmra.mrb[4].mxu0 %v5884_v12 }
 0x27b   :  { %2566 = vmatpush1.bf16.msra.mxu1 %v4696_v10  ;;  %4237 = vmatpush3.bf16.msra.mxu0 %v4700_v11  ;;  %v4816_v10 = vld [vmem:[%s6546_s7 + $0x64] ss:$8 sps:$4 sm:$0xff]   ;;  %v4754_v11 = vld [vmem:[%s6544_s5 + $0x320] ss:$28 sps:$4 sm:$0xff]  }
 0x27c   :  { %2597 = vmatprep.mubr.bf16.mxu1 %v5752_v18  ;;  %2679 = vmatprep.mubr.bf16.mxu0 %v5752_v18  ;;  %v4710_v18 = vld [vmem:[%s6544_s5 + $0x88] ss:$28 sps:$4 sm:$0xff]  }
 0x27d   :  { %2567 = vmatprep.subr.bf16.mxu1 %v4703_v7  ;;  %4238 = vmatprep.subr.bf16.mxu0 %v4704_v13  ;;  %v4814_v7 = vld [vmem:[%s6546_s7 + $0x60] ss:$8 sps:$4 sm:$0xff]   ;;  %v4759_v13 = vld [vmem:[%s6544_s5 + $0x35c] ss:$28 sps:$4 sm:$0xff]  }
 0x27f   :  { %2568 = vmatpush1.bf16.msra.mxu1 %v4701_v14  ;;  %4239 = vmatpush3.bf16.msra.mxu0 %v4705_v15  ;;  %v4819_v14 = vld [vmem:[%s6546_s7 + $0x74] ss:$8 sps:$4 sm:$0xff]  }
 0x280   :  { %2569 = vmatprep.subr.bf16.mxu1 %v4708_v16  ;;  %4240 = vmatprep.subr.bf16.mxu0 %v4709_v17  ;;  %v4757_v15 = vld [vmem:[%s6544_s5 + $0x358] ss:$28 sps:$4 sm:$0xff]  }
 0x281   :  { %v4817_v16 = vld [vmem:[%s6546_s7 + $0x70] ss:$8 sps:$4 sm:$0xff]  }
 0x282   :  { %v4762_v17 = vld [vmem:[%s6544_s5 + $0x394] ss:$28 sps:$4 sm:$0xff]  }
 0x283   :  { %2570 = vmatpush1.bf16.msra.mxu1 %v4706_v19  ;;  %4241 = vmatpush3.bf16.msra.mxu0 %v4710_v18  ;;  %v4822_v19 = vld [vmem:[%s6546_s7 + $0x84] ss:$8 sps:$4 sm:$0xff]  }
 0x284   :  { %2571 = vmatprep.subr.bf16.mxu1 %v4713_v20  ;;  %4242 = vmatprep.subr.bf16.mxu0 %v4714_v22  ;;  %v4760_v18 = vld [vmem:[%s6544_s5 + $0x390] ss:$28 sps:$4 sm:$0xff]   ;;  %v4820_v22 = vld [vmem:[%s6546_s7 + $0x80] ss:$8 sps:$4 sm:$0xff]  }
 0x285   :  { %v4765_v20 = vld [vmem:[%s6544_s5 + $0x3cc] ss:$28 sps:$4 sm:$0xff]  }
 0x287   :  { %2572 = vmatpush1.bf16.msra.mxu1 %v4711_v23  ;;  %4243 = vmatpush3.bf16.msra.mxu0 %v4715_v24  ;;  %v4825_v23 = vld [vmem:[%s6546_s7 + $0x94] ss:$8 sps:$4 sm:$0xff]   ;;  %v4763_v24 = vld [vmem:[%s6544_s5 + $0x3c8] ss:$28 sps:$4 sm:$0xff]  }
 0x288   :  { %2573 = vmatprep.subr.bf16.mxu1 %v4718_v25  ;;  %4244 = vmatprep.subr.bf16.mxu0 %v4719_v26  ;;  %v4768_v25 = vld [vmem:[%s6544_s5 + $0x404] ss:$28 sps:$4 sm:$0xff]   ;;  %v4823_v26 = vld [vmem:[%s6546_s7 + $0x90] ss:$8 sps:$4 sm:$0xff]  }
 0x28b   :  { %2574 = vmatpush1.bf16.msra.mxu1 %v4716_v27  ;;  %4245 = vmatpush3.bf16.msra.mxu0 %v4720_v28  ;;  %v4766_v27 = vld [vmem:[%s6544_s5 + $0x400] ss:$28 sps:$4 sm:$0xff]  }
 0x28c   :  { %2575 = vmatprep.subr.bf16.mxu1 %v4723_v29  ;;  %4246 = vmatprep.subr.bf16.mxu0 %v4724_v30  ;;  %v4771_v28 = vld [vmem:[%s6544_s5 + $0x43c] ss:$28 sps:$4 sm:$0xff]   ;;  %v4826_v29 = vld [vmem:[%s6546_s7 + $0xa0] ss:$8 sps:$4 sm:$0xff]  }
 0x28d   :  { %v4831_v30 = vld [vmem:[%s6546_s7 + $0xb4] ss:$8 sps:$4 sm:$0xff]  }
 0x28f   :  { %2576 = vmatpush1.bf16.msra.mxu1 %v4721_v31  ;;  %4247 = vmatpush3.bf16.msra.mxu0 %v4725_v32  ;;  %v4769_v31 = vld [vmem:[%s6544_s5 + $0x438] ss:$28 sps:$4 sm:$0xff]  }
 0x290   :  { %2577 = vmatprep.subr.bf16.mxu1 %v4728_v33  ;;  %4248 = vmatprep.subr.bf16.mxu0 %v4729_v34  ;;  %v4774_v32 = vld [vmem:[%s6544_s5 + $0x474] ss:$28 sps:$4 sm:$0xff]   ;;  %v4834_v34 = vld [vmem:[%s6546_s7 + $0xc4] ss:$8 sps:$4 sm:$0xff]  }
 0x291   :  { %v4829_v33 = vld [vmem:[%s6546_s7 + $0xb0] ss:$8 sps:$4 sm:$0xff]  }
 0x293   :  { %2578 = vmatpush1.bf16.msra.mxu1 %v4726_v35  ;;  %4249 = vmatpush3.bf16.msra.mxu0 %v4730_v36  ;;  %v4772_v35 = vld [vmem:[%s6544_s5 + $0x470] ss:$28 sps:$4 sm:$0xff]  }
 0x294   :  { %2579 = vmatprep.subr.bf16.mxu1 %v4733_v37  ;;  %4250 = vmatprep.subr.bf16.mxu0 %v4734_v38  ;;  %v4777_v36 = vld [vmem:[%s6544_s5 + $0x4ac] ss:$28 sps:$4 sm:$0xff]   ;;  %v4837_v38 = vld [vmem:[%s6546_s7 + $0xd4] ss:$8 sps:$4 sm:$0xff]  }
 0x295   :  { %v4832_v37 = vld [vmem:[%s6546_s7 + $0xc0] ss:$8 sps:$4 sm:$0xff]  }
 0x297   :  { %2580 = vmatpush1.bf16.msra.mxu1 %v4731_v39  ;;  %4251 = vmatpush3.bf16.msra.mxu0 %v4735_v40  ;;  %v4775_v39 = vld [vmem:[%s6544_s5 + $0x4a8] ss:$28 sps:$4 sm:$0xff]  }
 0x298   :  { %2581 = vmatprep.subr.bf16.mxu1 %v4738_v41  ;;  %3357 = vmatprep.subr.bf16.mxu0 %v4798_v42  ;;  %v4780_v40 = vld [vmem:[%s6544_s5 + $0x4e4] ss:$28 sps:$4 sm:$0xff]   ;;  %v4835_v41 = vld [vmem:[%s6546_s7 + $0xd0] ss:$8 sps:$4 sm:$0xff]  }
 0x299   :  { %v4840_v42 = vld [vmem:[%s6546_s7 + $0xe4] ss:$8 sps:$4 sm:$0xff]  }
 0x29a   :  { %2680 = vmatmul.mubr.bf16.vlgmr.msra.gmra.mrb[8].mxu0 %v5760_v21 }
 0x29b   :  { %2582 = vmatpush1.bf16.msra.mxu1 %v4736_v43  ;;  %3358 = vmatpush1.bf16.msra.mxu0 %v4796_v44  ;;  %v4778_v43 = vld [vmem:[%s6544_s5 + $0x4e0] ss:$28 sps:$4 sm:$0xff]  }
 0x29c   :  { %2583 = vmatprep.subr.bf16.mxu1 %v4741_v45  ;;  %3359 = vmatprep.subr.bf16.mxu0 %v4801_v47  ;;  %v4783_v44 = vld [vmem:[%s6544_s5 + $0x51c] ss:$28 sps:$4 sm:$0xff]   ;;  %v4838_v45 = vld [vmem:[%s6546_s7 + $0xe0] ss:$8 sps:$4 sm:$0xff]  }
 0x29d   :  { %v4843_v47 = vld [vmem:[%s6546_s7 + $0xf4] ss:$8 sps:$4 sm:$0xff]  }
 0x29f   :  { %2584 = vmatpush1.bf16.msra.mxu1 %v4739_v49  ;;  %3360 = vmatpush1.bf16.msra.mxu0 %v4799_v51  ;;  %v4781_v49 = vld [vmem:[%s6544_s5 + $0x518] ss:$28 sps:$4 sm:$0xff]  }
 0x2a0   :  { %2585 = vmatprep.subr.bf16.mxu1 %v4744_v52  ;;  %3361 = vmatprep.subr.bf16.mxu0 %v4804_v53  ;;  %v4786_v51 = vld [vmem:[%s6544_s5 + $0x554] ss:$28 sps:$4 sm:$0xff]   ;;  %v4846_v53 = vld [vmem:[%s6546_s7 + $0x104] ss:$8 sps:$4 sm:$0xff]  }
 0x2a1   :  { %v4841_v52 = vld [vmem:[%s6546_s7 + $0xf0] ss:$8 sps:$4 sm:$0xff]  }
 0x2a3   :  { %2586 = vmatpush1.bf16.msra.mxu1 %v4742_v54  ;;  %3362 = vmatpush1.bf16.msra.mxu0 %v4802_v55  ;;  %v4784_v54 = vld [vmem:[%s6544_s5 + $0x550] ss:$28 sps:$4 sm:$0xff]   ;;  %v4787_v55 = vld [vmem:[%s6544_s5 + $0x398] ss:$28 sps:$4 sm:$0xff]  }
 0x2a4   :  { %2587 = vmatprep.subr.bf16.mxu1 %v4747_v56  ;;  %3363 = vmatprep.subr.bf16.mxu0 %v4807_v57  ;;  %v4788_v56 = vld [vmem:[%s6544_s5 + $0x3d0] ss:$28 sps:$4 sm:$0xff]   ;;  %v4789_v57 = vld [vmem:[%s6544_s5 + $0x408] ss:$28 sps:$4 sm:$0xff]  }
 0x2a7   :  { %2588 = vmatpush1.bf16.msra.mxu1 %v4745_v58  ;;  %3364 = vmatpush1.bf16.msra.mxu0 %v4805_v61  ;;  %v4790_v58 = vld [vmem:[%s6544_s5 + $0x440] ss:$28 sps:$4 sm:$0xff]   ;;  %v4792_v61 = vld [vmem:[%s6544_s5 + $0x4b0] ss:$28 sps:$4 sm:$0xff]  }
 0x2a8   :  { %2589 = vmatprep.subr.bf16.mxu1 %v4750_v62  ;;  %3365 = vmatprep.subr.bf16.mxu0 %v4810_v63  ;;  %v4793_v62 = vld [vmem:[%s6544_s5 + $0x4e8] ss:$28 sps:$4 sm:$0xff]   ;;  %v4794_v63 = vld [vmem:[%s6544_s5 + $0x520] ss:$28 sps:$4 sm:$0xff]  }
 0x2ab   :  { %2590 = vmatpush1.bf16.msra.mxu1 %v4748_v0  ;;  %3366 = vmatpush1.bf16.msra.mxu0 %v4808_v1  ;;  %v4795_v0 = vld [vmem:[%s6544_s5 + $0x558] ss:$28 sps:$4 sm:$0xff]   ;;  %v6227_v1 = vld [vmem:[%s6545_s6] sm:$0x7f] }
 0x2ac   :  { %2591 = vmatprep.subr.bf16.mxu1 %v4753_v3  ;;  %3367 = vmatprep.subr.bf16.mxu0 %v4813_v4  ;;  %v1466_v3 = vrot.slane %v6227_v1, %v5545_v48  ;;  %v1470_v4 = vrot.slane %v6227_v1, %v5551_v50 }
 0x2af   :  { %2592 = vmatpush1.bf16.msra.mxu1 %v4751_v5  ;;  %3368 = vmatpush1.bf16.msra.mxu0 %v4811_v6  ;;  %v1478_v5 = vrot.slane %v6227_v1, %v898_v60  ;;  %v4844_v60 = vld [vmem:[%s6546_s7 + $0x100] ss:$8 sps:$4 sm:$0xff]  }
 0x2b0   :  { %2593 = vmatprep.subr.bf16.mxu1 %v4756_v8  ;;  %3369 = vmatprep.subr.bf16.mxu0 %v4816_v10 }
 0x2b3   :  { %2594 = vmatpush1.bf16.msra.mxu1 %v4754_v11  ;;  %3370 = vmatpush1.bf16.msra.mxu0 %v4814_v7 }
 0x2b4   :  { %2595 = vmatprep.subr.bf16.mxu1 %v4759_v13  ;;  %3371 = vmatprep.subr.bf16.mxu0 %v4819_v14 }
 0x2b7   :  { %2596 = vmatpush1.bf16.msra.mxu1 %v4757_v15  ;;  %3372 = vmatpush1.bf16.msra.mxu0 %v4817_v16 }
 0x2b8   :  { %2606 = vmatprep.subr.bf16.mxu1 %v4762_v17  ;;  %3373 = vmatprep.subr.bf16.mxu0 %v4822_v19 }
 0x2ba   :  { %2598 = vmatmul.mubr.bf16.vlgmr.msra.gmra.mrb[16].mxu1 %v5760_v21  ;;  %v4828_v21 = vld [vmem:[%s6546_s7 + $0xa4] ss:$8 sps:$4 sm:$0xff]  }
 0x2bb   :  { %2607 = vmatpush1.bf16.msra.mxu1 %v4760_v18  ;;  %4112 = vmatprep.mubr.msk.bf16.mxu1 %vm660_vm0, %v5876_v9 }
 0x2bc   :  { %2608 = vmatprep.subr.bf16.mxu1 %v4765_v20  ;;  %3374 = vmatpush1.bf16.msra.mxu0 %v4820_v22 }
 0x2bd   :  { %3375 = vmatprep.subr.bf16.mxu0 %v4825_v23 }
 0x2bf   :  { %2609 = vmatpush1.bf16.msra.mxu1 %v4763_v24  ;;  %v4849_v24 = vld [vmem:[%s6546_s7 + $0x114] ss:$8 sps:$4 sm:$0xff]  }
 0x2c0   :  { %2610 = vmatprep.subr.bf16.mxu1 %v4768_v25  ;;  %3376 = vmatpush1.bf16.msra.mxu0 %v4823_v26  ;;  %v4847_v26 = vld [vmem:[%s6546_s7 + $0x110] ss:$8 sps:$4 sm:$0xff]  }
 0x2c1   :  { %3377 = vmatprep.subr.bf16.mxu0 %v4828_v21  ;;  %v4852_v21 = vld [vmem:[%s6546_s7 + $0x124] ss:$8 sps:$4 sm:$0xff]  }
 0x2c3   :  { %2611 = vmatpush1.bf16.msra.mxu1 %v4766_v27  ;;  %v4850_v27 = vld [vmem:[%s6546_s7 + $0x120] ss:$8 sps:$4 sm:$0xff]  }
 0x2c4   :  { %2612 = vmatprep.subr.bf16.mxu1 %v4771_v28  ;;  %3378 = vmatpush1.bf16.msra.mxu0 %v4826_v29  ;;  %v4855_v28 = vld [vmem:[%s6546_s7 + $0x134] ss:$8 sps:$4 sm:$0xff]   ;;  %v4853_v29 = vld [vmem:[%s6546_s7 + $0x130] ss:$8 sps:$4 sm:$0xff]  }
 0x2c5   :  { %3379 = vmatprep.subr.bf16.mxu0 %v4831_v30  ;;  %v4858_v30 = vld [vmem:[%s6546_s7 + $0x144] ss:$8 sps:$4 sm:$0xff]  }
 0x2c7   :  { %2613 = vmatpush1.bf16.msra.mxu1 %v4769_v31  ;;  %v4946_v31 = vld [vmem:[%s6548_s9] sm:$0xff]  }
 0x2c8   :  { %2614 = vmatprep.subr.bf16.mxu1 %v4774_v32  ;;  %3380 = vmatpush1.bf16.msra.mxu0 %v4829_v33  ;;  %v4856_v32 = vld [vmem:[%s6546_s7 + $0x140] ss:$8 sps:$4 sm:$0xff]   ;;  %v4861_v33 = vld [vmem:[%s6546_s7 + $0x154] ss:$8 sps:$4 sm:$0xff]  }
 0x2c9   :  { %3381 = vmatprep.subr.bf16.mxu0 %v4834_v34  ;;  %v4947_v34 = vld [vmem:[%s6548_s9 + $0x8] sm:$0xff]  }
 0x2cb   :  { %2615 = vmatpush1.bf16.msra.mxu1 %v4772_v35  ;;  %v4859_v35 = vld [vmem:[%s6546_s7 + $0x150] ss:$8 sps:$4 sm:$0xff]  }
 0x2cc   :  { %2616 = vmatprep.subr.bf16.mxu1 %v4777_v36  ;;  %3382 = vmatpush1.bf16.msra.mxu0 %v4832_v37  ;;  %v4864_v36 = vld [vmem:[%s6546_s7 + $0x164] ss:$8 sps:$4 sm:$0xff]   ;;  %v4948_v37 = vld [vmem:[%s6548_s9 + $0x10] sm:$0xff]  }
 0x2cd   :  { %3383 = vmatprep.subr.bf16.mxu0 %v4837_v38  ;;  %v4862_v38 = vld [vmem:[%s6546_s7 + $0x160] ss:$8 sps:$4 sm:$0xff]  }
 0x2cf   :  { %2617 = vmatpush1.bf16.msra.mxu1 %v4775_v39  ;;  %v4867_v39 = vld [vmem:[%s6546_s7 + $0x174] ss:$8 sps:$4 sm:$0xff]  }
 0x2d0   :  { %2618 = vmatprep.subr.bf16.mxu1 %v4780_v40  ;;  %3384 = vmatpush1.bf16.msra.mxu0 %v4835_v41  ;;  %v4949_v40 = vld [vmem:[%s6548_s9 + $0x18] sm:$0xff]  }
 0x2d1   :  { %3385 = vmatprep.subr.bf16.mxu0 %v4840_v42 }
 0x2d3   :  { %2619 = vmatpush1.bf16.msra.mxu1 %v4778_v43 }
 0x2d4   :  { %2620 = vmatprep.subr.bf16.mxu1 %v4783_v44  ;;  %3386 = vmatpush1.bf16.msra.mxu0 %v4838_v45  ;;  %v4865_v45 = vld [vmem:[%s6546_s7 + $0x170] ss:$8 sps:$4 sm:$0xff]  }
 0x2d5   :  { %3387 = vmatprep.subr.bf16.mxu0 %v4843_v47 }
 0x2d7   :  { %2621 = vmatpush1.bf16.msra.mxu1 %v4781_v49  ;;  %v4870_v49 = vld [vmem:[%s6546_s7 + $0x184] ss:$8 sps:$4 sm:$0xff]  }
 0x2d8   :  { %2622 = vmatprep.subr.bf16.mxu1 %v4786_v51  ;;  %3388 = vmatpush1.bf16.msra.mxu0 %v4841_v52  ;;  %v4950_v51 = vld [vmem:[%s6548_s9 + $0x20] sm:$0xff]  }
 0x2d9   :  { %3398 = vmatprep.subr.bf16.mxu0 %v4846_v53  ;;  %v4868_v52 = vld [vmem:[%s6546_s7 + $0x180] ss:$8 sps:$4 sm:$0xff]   ;;  %v4873_v53 = vld [vmem:[%s6546_s7 + $0x194] ss:$8 sps:$4 sm:$0xff]  }
 0x2db   :  { %2623 = vmatpush1.bf16.msra.mxu1 %v4784_v54  ;;  %v4951_v54 = vld [vmem:[%s6548_s9 + $0x28] sm:$0xff]  }
 0x2dc   :  { %2687 = vmatprep.subr.bf16.mxu1 %v4987_v2 }
 0x2de   :  { %2639 = vmatmul.mubr.bf16.vlgmr.msra.gmra.mrb[16].mxu1 %v5884_v12 }
 0x2df   :  { %2688 = vmatpush1.bf16.msra.mxu1 %v4787_v55  ;;  %4113 = vmatprep.mubr.msk.bf16.mxu1 %vm660_vm0, %v5876_v9  ;;  %v4791_v9 = vld [vmem:[%s6544_s5 + $0x478] ss:$28 sps:$4 sm:$0xff]  }
 0x2e0   :  { %2689 = vmatprep.subr.bf16.mxu1 %v4987_v2  ;;  %v4871_v55 = vld [vmem:[%s6546_s7 + $0x190] ss:$8 sps:$4 sm:$0xff]  }
 0x2e3   :  { %2690 = vmatpush1.bf16.msra.mxu1 %v4788_v56  ;;  %v4876_v56 = vld [vmem:[%s6546_s7 + $0x1a4] ss:$8 sps:$4 sm:$0xff]  }
 0x2e4   :  { %2691 = vmatprep.subr.bf16.mxu1 %v4987_v2 }
 0x2e7   :  { %2692 = vmatpush1.bf16.msra.mxu1 %v4789_v57  ;;  %v4952_v57 = vld [vmem:[%s6548_s9 + $0x30] sm:$0xff]  }
 0x2e8   :  { %2693 = vmatprep.subr.bf16.mxu1 %v4987_v2 }
 0x2eb   :  { %2694 = vmatpush1.bf16.msra.mxu1 %v4790_v58  ;;  %v4874_v58 = vld [vmem:[%s6546_s7 + $0x1a0] ss:$8 sps:$4 sm:$0xff]  }
 0x2ec   :  { %2695 = vmatprep.subr.bf16.mxu1 %v4987_v2 }
 0x2ef   :  { %2696 = vmatpush1.bf16.msra.mxu1 %v4791_v9  ;;  %v4879_v9 = vld [vmem:[%s6546_s7 + $0x1b4] ss:$8 sps:$4 sm:$0xff]  }
 0x2f0   :  { %2697 = vmatprep.subr.bf16.mxu1 %v4987_v2 }
 0x2f3   :  { %2698 = vmatpush1.bf16.msra.mxu1 %v4792_v61  ;;  %v4953_v61 = vld [vmem:[%s6548_s9 + $0x38] sm:$0xff]  }
 0x2f4   :  { %2699 = vmatprep.subr.bf16.mxu1 %v4987_v2 }
 0x2f7   :  { %2700 = vmatpush1.bf16.msra.mxu1 %v4793_v62  ;;  %v4877_v62 = vld [vmem:[%s6546_s7 + $0x1b0] ss:$8 sps:$4 sm:$0xff]  }
 0x2f8   :  { %2701 = vmatprep.subr.bf16.mxu1 %v4987_v2 }
 0x2fb   :  { %2702 = vmatpush1.bf16.msra.mxu1 %v4794_v63  ;;  %v4882_v63 = vld [vmem:[%s6546_s7 + $0x1c4] ss:$8 sps:$4 sm:$0xff]  }
 0x2fc   :  { %2703 = vmatprep.subr.bf16.mxu1 %v4987_v2 }
 0x2ff   :  { %2704 = vmatpush1.bf16.msra.mxu1 %v4795_v0  ;;  %v4954_v0 = vld [vmem:[%s6548_s9 + $0x40] sm:$0xff]  }
 0x300   :  { %3640 = vmatprep.subr.bf16.mxu1 %v4987_v2 }
 0x302   :  { %2720 = vmatmul.mubr.bf16.vlgmr.msra.gmra.mrb[20].mxu1 %v5884_v12 }
 0x303   :  { %3641 = vmatpush1.bf16.msra.mxu1 %v4946_v31 }
 0x304   :  { %3642 = vmatprep.subr.bf16.mxu1 %v4987_v2 }
 0x307   :  { %3643 = vmatpush1.bf16.msra.mxu1 %v4947_v34 }
 0x308   :  { %3644 = vmatprep.subr.bf16.mxu1 %v4987_v2 }
 0x30b   :  { %3645 = vmatpush1.bf16.msra.mxu1 %v4948_v37 }
 0x30c   :  { %3646 = vmatprep.subr.bf16.mxu1 %v4987_v2 }
 0x30f   :  { %3647 = vmatpush1.bf16.msra.mxu1 %v4949_v40  ;;  %v4921_v40 = vld [vmem:[%s6546_s7 + $0x294] ss:$8 sps:$4 sm:$0xff]  }
 0x310   :  { %3648 = vmatprep.subr.bf16.mxu1 %v4987_v2 }
 0x313   :  { %3649 = vmatpush1.bf16.msra.mxu1 %v4950_v51  ;;  %v4925_v51 = vld [vmem:[%s6546_s7 + $0x2b0] ss:$8 sps:$4 sm:$0xff]  }
 0x314   :  { %3650 = vmatprep.subr.bf16.mxu1 %v4987_v2 }
 0x317   :  { %3651 = vmatpush1.bf16.msra.mxu1 %v4951_v54  ;;  %v1481_v54 = vsub.s32 4, %v5539_v46 }
 0x318   :  { %3652 = vmatprep.subr.bf16.mxu1 %v4987_v2 }
 0x31b   :  { %3653 = vmatpush1.bf16.msra.mxu1 %v4952_v57  ;;  %v1482_v57 = vrot.slane %v6227_v1, %v1481_v54 }
 0x31c   :  { %3654 = vmatprep.subr.bf16.mxu1 %v4987_v2 }
 0x31f   :  { %3655 = vmatpush1.bf16.msra.mxu1 %v4953_v61 }
 0x320   :  { %3656 = vmatprep.subr.bf16.mxu1 %v4987_v2 }
 0x323   :  { %3657 = vmatpush1.bf16.msra.mxu1 %v4954_v0  ;;  %v4937_v0 = vld [vmem:[%s6546_s7 + $0x2f0] ss:$8 sps:$4 sm:$0xff]  }
 0x324   :  { %3658 = vmatprep.subr.bf16.mxu1 %v4987_v2 }
 0x34d   :  { %v2476_v6 = vpop.f32.mrb[12].mxu1  ;;  %v6236_v8 = vpop.f32.mrb[4].mxu0 }
 0x34e   :  { %v4279_v10 = vadd.f32 %v2476_v6, %v1466_v3  ;;  %v2478_v12 = vpop.f32.mrb[13].mxu1  ;;  %v2560_v11 = vpop.f32.mrb[5].mxu0  ;;  %v4880_v3 = vld [vmem:[%s6546_s7 + $0x1c0] ss:$8 sps:$4 sm:$0xff]   ;;  %v4883_v6 = vld [vmem:[%s6546_s7 + $0x1d0] ss:$8 sps:$4 sm:$0xff]  }
 0x34f   :  { %v4280_v7 = vadd.f32 %v2478_v12, %v1470_v4  ;;  %v4282_v13 = vadd.f32 %v2560_v11, %v1478_v5  ;;  %v2480_v14 = vpop.f32.mrb[14].mxu1  ;;  %v2562_v15 = vpop.f32.mrb[6].mxu0  ;;  %v4885_v4 = vld [vmem:[%s6546_s7 + $0x1d4] ss:$8 sps:$4 sm:$0xff]   ;;  %v4955_v5 = vld [vmem:[%s6548_s9 + $0x48] sm:$0xff]  }
 0x350   :  { %v2727_v16 = vmax.f32 %v4279_v10, 0.0  ;;  %v2481_v17 = vpop.f32.mrb[15].mxu1  ;;  %v2563_v19 = vpop.f32.mrb[7].mxu0  ;;  %v1474_v10 = vrot.slane %v6227_v1, %v894_v59  ;;  %v4888_v12 = vld [vmem:[%s6546_s7 + $0x1e4] ss:$8 sps:$4 sm:$0xff]   ;;  %3659 = vmatpush1.bf16.msra.mxu1 %v4955_v5  ;;  %v4956_v11 = vld [vmem:[%s6548_s9 + $0x50] sm:$0xff]  }
 0x351   :  { %v2728_v18 = vmax.f32 %v4280_v7, 0.0  ;;  %v2730_v20 = vmax.f32 %v4282_v13, 0.0  ;;  %3660 = vmatprep.subr.bf16.mxu1 %v4987_v2  ;;  %v4886_v7 = vld [vmem:[%s6546_s7 + $0x1e0] ss:$8 sps:$4 sm:$0xff]   ;;  %v4891_v59 = vld [vmem:[%s6546_s7 + $0x1f4] ss:$8 sps:$4 sm:$0xff]  }
 0x352   :  { %v2734_v23 = vpack.c.bf16 %v2727_v16, %v2727_v16  ;;  %v4281_v13 = vadd.f32 %v6236_v8, %v1474_v10  ;;  %v4889_v14 = vld [vmem:[%s6546_s7 + $0x1f0] ss:$8 sps:$4 sm:$0xff]   ;;  %v4894_v16 = vld [vmem:[%s6546_s7 + $0x204] ss:$8 sps:$4 sm:$0xff]   ;;  %v4892_v8 = vld [vmem:[%s6546_s7 + $0x200] ss:$8 sps:$4 sm:$0xff]  }
 0x353   :  { %v2735_v22 = vpack.c.bf16 %v2728_v18, %v2728_v18  ;;  %v2737_v25 = vpack.c.bf16 %v2730_v20, %v2730_v20  ;;  %v4897_v19 = vld [vmem:[%s6546_s7 + $0x214] ss:$8 sps:$4 sm:$0xff]   ;;  %v4895_v18 = vld [vmem:[%s6546_s7 + $0x210] ss:$8 sps:$4 sm:$0xff]   ;;  %v4900_v20 = vld [vmem:[%s6546_s7 + $0x224] ss:$8 sps:$4 sm:$0xff]  }
 0x354   :  { %3661 = vmatpush1.bf16.msra.mxu1 %v4956_v11  ;;  %v2729_v15 = vmax.f32 %v4281_v13, 0.0  ;;  %v4942_v5 = vld [vmem:[%s6546_s7 + $0x304] ss:$8 sps:$4 sm:$0xff]  }
 0x355   :  { %3389 = vmatprep.mubr.bf16.mxu0 %v2735_v22  ;;  %3662 = vmatprep.subr.bf16.mxu1 %v4987_v2  ;;  %v4898_v22 = vld [vmem:[%s6546_s7 + $0x220] ss:$8 sps:$4 sm:$0xff]  }
 0x356   :  { %3390 = vmatmul.mubr.bf16.vlgmr.msra.gmra.mrb[12].mxu0 %v2734_v23  ;;  %v2736_v17 = vpack.c.bf16 %v2729_v15, %v2729_v15  ;;  %v4901_v23 = vld [vmem:[%s6546_s7 + $0x230] ss:$8 sps:$4 sm:$0xff]  }
 0x357   :  { %3399 = vmatpush1.bf16.msra.mxu0 %v4844_v60  ;;  %3430 = vmatprep.mubr.bf16.mxu0 %v2737_v25  ;;  %v4903_v60 = vld [vmem:[%s6546_s7 + $0x234] ss:$8 sps:$4 sm:$0xff]   ;;  %v4904_v25 = vld [vmem:[%s6546_s7 + $0x240] ss:$8 sps:$4 sm:$0xff]  }
 0x358   :  { %3400 = vmatprep.subr.bf16.mxu0 %v4849_v24  ;;  %v4906_v24 = vld [vmem:[%s6546_s7 + $0x244] ss:$8 sps:$4 sm:$0xff]  }
 0x35b   :  { %3401 = vmatpush1.bf16.msra.mxu0 %v4847_v26  ;;  %v4909_v26 = vld [vmem:[%s6546_s7 + $0x254] ss:$8 sps:$4 sm:$0xff]  }
 0x35c   :  { %3402 = vmatprep.subr.bf16.mxu0 %v4852_v21  ;;  %v4907_v21 = vld [vmem:[%s6546_s7 + $0x250] ss:$8 sps:$4 sm:$0xff]  }
 0x35f   :  { %3403 = vmatpush1.bf16.msra.mxu0 %v4850_v27  ;;  %v4912_v27 = vld [vmem:[%s6546_s7 + $0x264] ss:$8 sps:$4 sm:$0xff]  }
 0x360   :  { %3404 = vmatprep.subr.bf16.mxu0 %v4855_v28  ;;  %v4910_v28 = vld [vmem:[%s6546_s7 + $0x260] ss:$8 sps:$4 sm:$0xff]  }
 0x363   :  { %3405 = vmatpush1.bf16.msra.mxu0 %v4853_v29  ;;  %v1485_v29 = vsub.s32 5, %v5539_v46 }
 0x364   :  { %3406 = vmatprep.subr.bf16.mxu0 %v4858_v30  ;;  %v4915_v30 = vld [vmem:[%s6546_s7 + $0x274] ss:$8 sps:$4 sm:$0xff]  }
 0x365   :  { %v1486_v31 = vrot.slane %v6227_v1, %v1485_v29  ;;  %v4959_v29 = vld [vmem:[%s6550_s11] sm:$0xff]  }
 0x367   :  { %3407 = vmatpush1.bf16.msra.mxu0 %v4856_v32  ;;  %v4913_v32 = vld [vmem:[%s6546_s7 + $0x270] ss:$8 sps:$4 sm:$0xff]  }
 0x368   :  { %3408 = vmatprep.subr.bf16.mxu0 %v4861_v33  ;;  %v4918_v33 = vld [vmem:[%s6546_s7 + $0x284] ss:$8 sps:$4 sm:$0xff]  }
 0x36b   :  { %3409 = vmatpush1.bf16.msra.mxu0 %v4859_v35 }
 0x36c   :  { %3410 = vmatprep.subr.bf16.mxu0 %v4864_v36 }
 0x36d   :  { %v4252_v41 = vpop.f32.mrb[8].mxu0 }
 0x36e   :  { %v4253_v42 = vpop.f32.mrb[9].mxu0 }
 0x36f   :  { %v6295_v43 = vadd.f32 %v4253_v42, %v4252_v41  ;;  %v4255_v44 = vpop.f32.mrb[10].mxu0  ;;  %3411 = vmatpush1.bf16.msra.mxu0 %v4862_v38  ;;  %v4916_v38 = vld [vmem:[%s6546_s7 + $0x280] ss:$8 sps:$4 sm:$0xff]  }
 0x370   :  { %v4256_v47 = vpop.f32.mrb[11].mxu0  ;;  %3412 = vmatprep.subr.bf16.mxu0 %v4867_v39  ;;  %v4919_v44 = vld [vmem:[%s6546_s7 + $0x290] ss:$8 sps:$4 sm:$0xff]  }
 0x371   :  { %v4922_v47 = vld [vmem:[%s6546_s7 + $0x2a0] ss:$8 sps:$4 sm:$0xff]  }
 0x373   :  { %3413 = vmatpush1.bf16.msra.mxu0 %v4865_v45  ;;  %v4924_v45 = vld [vmem:[%s6546_s7 + $0x2a4] ss:$8 sps:$4 sm:$0xff]  }
 0x374   :  { %3414 = vmatprep.subr.bf16.mxu0 %v4870_v49  ;;  %v4927_v49 = vld [vmem:[%s6546_s7 + $0x2b4] ss:$8 sps:$4 sm:$0xff]  }
 0x377   :  { %3415 = vmatpush1.bf16.msra.mxu0 %v4868_v52  ;;  %v4930_v52 = vld [vmem:[%s6546_s7 + $0x2c4] ss:$8 sps:$4 sm:$0xff]  }
 0x378   :  { %3416 = vmatprep.subr.bf16.mxu0 %v4873_v53  ;;  %v4928_v53 = vld [vmem:[%s6546_s7 + $0x2c0] ss:$8 sps:$4 sm:$0xff]  }
 0x37b   :  { %3417 = vmatpush1.bf16.msra.mxu0 %v4871_v55  ;;  %v4933_v55 = vld [vmem:[%s6546_s7 + $0x2d4] ss:$8 sps:$4 sm:$0xff]  }
 0x37c   :  { %3418 = vmatprep.subr.bf16.mxu0 %v4876_v56  ;;  %v4931_v56 = vld [vmem:[%s6546_s7 + $0x2d0] ss:$8 sps:$4 sm:$0xff]  }
 0x37f   :  { %3419 = vmatpush1.bf16.msra.mxu0 %v4874_v58  ;;  %v4936_v58 = vld [vmem:[%s6546_s7 + $0x2e4] ss:$8 sps:$4 sm:$0xff]  }
 0x380   :  { %3420 = vmatprep.subr.bf16.mxu0 %v4879_v9  ;;  %v4934_v9 = vld [vmem:[%s6546_s7 + $0x2e0] ss:$8 sps:$4 sm:$0xff]  }
 0x383   :  { %3421 = vmatpush1.bf16.msra.mxu0 %v4877_v62  ;;  %v4939_v62 = vld [vmem:[%s6546_s7 + $0x2f4] ss:$8 sps:$4 sm:$0xff]  }
 0x384   :  { %3422 = vmatprep.subr.bf16.mxu0 %v4882_v63  ;;  %v1489_v63 = vsub.s32 6, %v5539_v46 }
 0x387   :  { %3423 = vmatpush1.bf16.msra.mxu0 %v4880_v3 }
 0x388   :  { %3424 = vmatprep.subr.bf16.mxu0 %v4885_v4  ;;  %v1490_v4 = vrot.slane %v6227_v1, %v1489_v63 }
 0x38a   :  { %v2682_v46 = vadd.f32 %v6295_v43, %v1490_v4 }
 0x38b   :  { %3425 = vmatpush1.bf16.msra.mxu0 %v4883_v6  ;;  %v4940_v6 = vld [vmem:[%s6546_s7 + $0x300] ss:$8 sps:$4 sm:$0xff]  }
 0x38c   :  { %3426 = vmatprep.subr.bf16.mxu0 %v4888_v12  ;;  %v4945_v12 = vld [vmem:[%s6546_s7 + $0x314] ss:$8 sps:$4 sm:$0xff]  }
 0x38f   :  { %3427 = vmatpush1.bf16.msra.mxu0 %v4886_v7 }
 0x390   :  { %3428 = vmatprep.subr.bf16.mxu0 %v4891_v59  ;;  %v4943_v59 = vld [vmem:[%s6546_s7 + $0x310] ss:$8 sps:$4 sm:$0xff]  }
 0x393   :  { %3429 = vmatpush1.bf16.msra.mxu0 %v4889_v14 }
 0x394   :  { %3439 = vmatprep.subr.bf16.mxu0 %v4894_v16  ;;  %v4957_v16 = vld [vmem:[%s6548_s9 + $0x58] sm:$0xff]  }
 0x395   :  { %3663 = vmatpush1.bf16.msra.mxu1 %v4957_v16 }
 0x396   :  { %3431 = vmatmul.mubr.bf16.vlgmr.msra.gmra.mrb[12].mxu0 %v2736_v17  ;;  %3664 = vmatprep.subr.bf16.mxu1 %v4987_v2 }
 0x397   :  { %3440 = vmatpush1.bf16.msra.mxu0 %v4892_v8  ;;  %v4958_v8 = vld [vmem:[%s6548_s9 + $0x60] ss:$0 sps:$4 sm:$0xff]  }
 0x398   :  { %3441 = vmatprep.subr.bf16.mxu0 %v4897_v19  ;;  %v3638_v17 = vsel %vm3636_vm4, %v4958_v8, 0  ;;  %v4988_v19 = vmov 0.0  }
 0x399   :  { %3665 = vmatpush1.bf16.msra.mxu1 %v3638_v17 }
 0x39a   :  { %4263 = vmatprep.subr.bf16.mxu1 %v4988_v19 }
 0x39b   :  { %3442 = vmatpush1.bf16.msra.mxu0 %v4895_v18  ;;  %v2841_v18 = vld [vmem:[%s6547_s8] sm:$0x3] }
 0x39c   :  { %3443 = vmatprep.subr.bf16.mxu0 %v4900_v20  ;;  %v2846_v20 = vrot.slane %v2841_v18, %v5545_v48  ;;  %v4960_v48 = vld [vmem:[%s6550_s11 + $0x8] sm:$0xff]  }
 0x39f   :  { %3444 = vmatpush1.bf16.msra.mxu0 %v4898_v22  ;;  %v2850_v22 = vrot.slane %v2841_v18, %v5551_v50  ;;  %v4961_v50 = vld [vmem:[%s6550_s11 + $0x10] sm:$0xff]  }
 0x3a0   :  { %3445 = vmatprep.subr.bf16.mxu0 %v4903_v60 }
 0x3a3   :  { %3446 = vmatpush1.bf16.msra.mxu0 %v4901_v23 }
 0x3a4   :  { %3447 = vmatprep.subr.bf16.mxu0 %v4906_v24 }
 0x3a7   :  { %3448 = vmatpush1.bf16.msra.mxu0 %v4904_v25 }
 0x3a8   :  { %3449 = vmatprep.subr.bf16.mxu0 %v4909_v26 }
 0x3ab   :  { %3450 = vmatpush1.bf16.msra.mxu0 %v4907_v21 }
 0x3ac   :  { %3451 = vmatprep.subr.bf16.mxu0 %v4912_v27 }
 0x3af   :  { %3452 = vmatpush1.bf16.msra.mxu0 %v4910_v28 }
 0x3b0   :  { %3453 = vmatprep.subr.bf16.mxu0 %v4915_v30 }
 0x3b1   :  { %v2640_v34 = vpop.f32.mrb[16].mxu1 }
 0x3b2   :  { %v2642_v35 = vpop.f32.mrb[17].mxu1  ;;  %v4283_v61 = vadd.f32 %v2640_v34, %v1482_v57 }
 0x3b3   :  { %v4284_v36 = vadd.f32 %v2642_v35, %v1486_v31  ;;  %v2644_v37 = vpop.f32.mrb[18].mxu1  ;;  %3454 = vmatpush1.bf16.msra.mxu0 %v4913_v32  ;;  %v4962_v31 = vld [vmem:[%s6550_s11 + $0x18] ss:$0 sps:$4 sm:$0x11]  }
 0x3b4   :  { %v2645_v39 = vpop.f32.mrb[19].mxu1  ;;  %3455 = vmatprep.subr.bf16.mxu0 %v4918_v33  ;;  %v2731_v3 = vmax.f32 %v4283_v61, 0.0  ;;  %v3723_v32 = vsel %vm3721_vm6, %v4962_v31, 0  ;;  %v4215_v33 = vld [vmem:[%s6549_s10] ss:$0 sm:$0xff]  ;;  %s4963_s10 = scalar_lea.vmem %s3773_s16, 128 }
 0x3b5   :  { %v2732_v41 = vmax.f32 %v4284_v36, 0.0  ;;  %p4964_p0 = scmp.ne.s32.totalorder %s3773_s16, %s4963_s10  ;;  %p4969_p2 = scmp.lt.s32.totalorder %s4963_s10, %s4963_s10 }
 0x3b6   :  { %v2738_v10 = vpack.c.bf16 %v2731_v3, %v2731_v3 }
 0x3b7   :  { %v2739_v42 = vpack.c.bf16 %v2732_v41, %v2732_v41  ;;  %3456 = vmatpush1.bf16.msra.mxu0 %v4916_v38  ;;  %v4230_v41 = vld [vmem:[%s6551_s12] ss:$0 sm:$0xff]  ;;  %p4970_p3 = por %p4969_p2, %p4968_p1 }
 0x3b8   :  { %3457 = vmatprep.subr.bf16.mxu0 %v4921_v40 }
 0x3b9   :  { %3471 = vmatprep.mubr.bf16.mxu0 %v2739_v42  ;;  %p4971_p4 = pnand %p4970_p3, %p4964_p0 }
 0x3bb   :  { %3458 = vmatpush1.bf16.msra.mxu0 %v4919_v44 }
 0x3bc   :  { %3459 = vmatprep.subr.bf16.mxu0 %v4924_v45 }
 0x3bf   :  { %3460 = vmatpush1.bf16.msra.mxu0 %v4922_v47 }
 0x3c0   :  { %3461 = vmatprep.subr.bf16.mxu0 %v4927_v49 }
 0x3c3   :  { %3462 = vmatpush1.bf16.msra.mxu0 %v4925_v51 }
 0x3c4   :  { %3463 = vmatprep.subr.bf16.mxu0 %v4930_v52 }
 0x3c7   :  { %3464 = vmatpush1.bf16.msra.mxu0 %v4928_v53 }
 0x3c8   :  { %3465 = vmatprep.subr.bf16.mxu0 %v4933_v55 }
 0x3cb   :  { %3466 = vmatpush1.bf16.msra.mxu0 %v4931_v56 }
 0x3cc   :  { %3467 = vmatprep.subr.bf16.mxu0 %v4936_v58 }
 0x3cf   :  { %3468 = vmatpush1.bf16.msra.mxu0 %v4934_v9 }
 0x3d0   :  { %3469 = vmatprep.subr.bf16.mxu0 %v4939_v62 }
 0x3d3   :  { %3470 = vmatpush1.bf16.msra.mxu0 %v4937_v0 }
 0x3d4   :  { %3480 = vmatprep.subr.bf16.mxu0 %v4942_v5 }
 0x3d5   :  { %v2721_v11 = vpop.f32.mrb[20].mxu1 }
 0x3d6   :  { %v2722_v7 = vadd.f32 %v2721_v11, %v2682_v46  ;;  %v2723_v1 = vpop.f32.mrb[21].mxu1  ;;  %3472 = vmatmul.mubr.bf16.vlgmr.msra.gmra.mrb[12].mxu0 %v2738_v10 }
 0x3d7   :  { %v2724_v13 = vpop.f32.mrb[22].mxu1  ;;  %3481 = vmatpush1.bf16.msra.mxu0 %v4940_v6  ;;  %3512 = vmatprep.mubr.bf16.mxu0 %v4987_v2 }
 0x3d8   :  { %v2725_v14 = vpop.f32.mrb[23].mxu1  ;;  %3482 = vmatprep.subr.bf16.mxu0 %v4945_v12  ;;  %v2733_v43 = vmax.f32 %v2722_v7, 0.0 }
 0x3da   :  { %v2740_v15 = vpack.c.bf16 %v2733_v43, %v2733_v43 }
 0x3db   :  { %3483 = vmatpush1.bf16.msra.mxu0 %v4943_v59 }
 0x3e2   :  { %4214 = vmatmul.mubr.msk.bf16.vlgmr.msra.gmra.mrb[12].mxu0 %vm3353_vm3, %v2740_v15 }
 0x4b5   :  { %v3514_v60 = vpop.f32.mrb[12].mxu0 }
 0x4b6   :  { %v4285_v23 = vadd.f32 %v3514_v60, %v2846_v20  ;;  %v3516_v2 = vpop.f32.mrb[13].mxu0 }
 0x4b7   :  { %v4286_v24 = vadd.f32 %v3516_v2, %v2850_v22  ;;  %v3518_v25 = vpop.f32.mrb[14].mxu0 }
 0x4b8   :  { %v3521_v26 = vmax.f32 %v4285_v23, 0.0  ;;  %v3519_v21 = vpop.f32.mrb[15].mxu0 }
 0x4b9   :  { %v3522_v27 = vmax.f32 %v4286_v24, 0.0 }
 0x4ba   :  { %v3523_v30 = vpack.c.bf16 %v3521_v26, %v3521_v26 }
 0x4bb   :  { %v3524_v28 = vpack.c.bf16 %v3522_v27, %v3522_v27 }
 0x4bd   :  { %4229 = vmatprep.mubr.msk.bf16.mxu1 %vm3632_vm5, %v3524_v28 }
 0x4be   :  { %3673 = vmatmul.mubr.bf16.vlgmr.msra.gmra.mrb[24].mxu1 %v3523_v30 }
 0x4bf   :  { %4264 = vmatpush3.bf16.msra.mxu1 %v4959_v29  ;;  %4271 = vmatprep.mubr.msk.bf16.mxu1 %vm4989_vm7, %v4988_v19 }
 0x4c0   :  { %4265 = vmatprep.subr.bf16.mxu1 %v4988_v19 }
 0x4c3   :  { %4266 = vmatpush3.bf16.msra.mxu1 %v4960_v48 }
 0x4c4   :  { %4267 = vmatprep.subr.bf16.mxu1 %v4988_v19 }
 0x4c7   :  { %4268 = vmatpush3.bf16.msra.mxu1 %v4961_v50 }
 0x4c8   :  { %4269 = vmatprep.subr.bf16.mxu1 %v4988_v19 }
 0x4cb   :  { %4270 = vmatpush3.bf16.msra.mxu1 %v3723_v32 }
 0x591   :  { %v3674_v34 = vpop.f32.mrb[24].mxu1 }
 0x592   :  { %v3675_v35 = vadd.f32 %v4215_v33, %v3674_v34  ;;  %v3676_v36 = vpop.f32.mrb[25].mxu1 }
 0x593   :  { %v3677_v37 = vpop.f32.mrb[26].mxu1 }
 0x594   :  { %v3680_v38 = vmax.f32 %v3675_v35, 0.0  ;;  %v3678_v39 = vpop.f32.mrb[27].mxu1 }
 0x596   :  { %v3681_v40 = vpack.c.bf16 %v3680_v38, %v3680_v38 }
 0x598   :  { %4272 = vmatmul.mubr.msk.bf16.vlgmr.msra.gmra.mrb[28].mxu1 %vm3717_vm8, %v3681_v40 }
 0x66b   :  { %v3759_v42 = vpop.f32.mrb[28].mxu1 }
 0x66c   :  { %v3760_v44 = vadd.f32 %v4230_v41, %v3759_v42  ;;  %v4273_v45 = vpop.f32.mrb[29].mxu1 }
 0x66d   :  { %v3762_v47 = vpop.f32.mrb[30].mxu1 }
 0x66e   :  { %3765 = vst [vmem:[#allocation2] sm:$0xff] %v3760_v44  ;;  %v4274_v49 = vpop.f32.mrb[31].mxu1 }
 0x66f   :  { %4974 = shalt.err (!%p4971_p4)
}
 0x670   :  { %s4975_s12 = scalar_lea.hbm %s6552_s13, 128 }
 0x671   :  { %p4976_p5 = scmp.ne.s32.totalorder %s6552_s13, %s4975_s12  ;;  %p4979_p6 = scmp.lt.u32.totalorder %s4975_s12, %s6552_s13 }
 0x673   :  { %p4981_p7 = pnand %p4979_p6, %p4976_p5 }
 0x675   :  { %4984 = shalt.err (!%p4981_p7)
}
 0x676   :  { %3775 = dma.vmem_to_hbm [thread:$0]  %s3773_s16, 128, %s6552_s13, [#allocation3]  }
 0x677   :  { %4985 = dma.done.wait [#allocation3], 128  }
 0x678   :  { %4986 = vsyncadd [#allocation3], 4294967168 }
 0x679   :  { %3779 = vsyncpa [#allocation3], 1 }

</bundles_post_ra>
